<compile_context>
chip_gen: v7x
topology: tpu7x:2x2x1
jax: 0.10.0
libtpu: 0.0.40
codegen_flags: <defaults>
</compile_context>

<pallas_src>
import functools

import jax
import jax.numpy as jnp
from jax import lax
from jax.experimental import pallas as pl
from jax.experimental.pallas import tpu as pltpu


def _self_attn_kernel(params_ref, xk_ref, xq_ref, o_ref, *, tk, e_dtype):
    """One (batch-block, query-block) tile of the fused attention layer.

    params_ref : SMEM (3,) f32  -> [c, a, bo] with c = wq*wk*scale, a = wv*wo
    xk_ref     : VMEM (BB, N)   -> full key/value rows of this batch block
    xq_ref     : VMEM (BB, NQ)  -> query slice of the same rows
    o_ref      : VMEM (BB, NQ)
    """
    c = params_ref[0]
    a = params_ref[1]
    bo = params_ref[2]

    xk = xk_ref[...]                                     # (BB, N)  f32
    xq = xq_ref[...]                                     # (BB, NQ) f32
    bb, n = xk.shape
    nq = xq.shape[-1]
    n_tiles = n // tk                                    # wrapper guarantees exact

    cxk = c * xk                                         # (BB, N) scaled keys
    # Exact rank-1 row max over ALL keys (replaces the N^2 XLU reduction):
    #   max_j c*x_i*x_j = max(x_i * max_j(c*x_j), x_i * min_j(c*x_j))
    cmax = jnp.max(cxk, axis=-1, keepdims=True)          # (BB, 1)
    cmin = jnp.min(cxk, axis=-1, keepdims=True)          # (BB, 1)
    m_b = jnp.maximum(xq * cmax, xq * cmin)[:, None, :]  # (BB, 1, NQ) per-query max
    xq_b = xq[:, None, :]                                # (BB, 1, NQ) (hoisted)

    def key_tile(t, red):
        start = pl.multiple_of(t * tk, tk)
        xk_t = xk_ref[:, pl.ds(start, tk)]               # (BB, TK) f32 key tile
        cxk_t = (c * xk_t)[:, :, None]                   # (BB, TK, 1) keys on sublanes
        # Transposed logits: e'[b, j, i] = exp(c*x_j*x_i - m_i) -> queries on
        # lanes, so the matmul output below is lane-dense in the query dim.
        arg = cxk_t * xq_b - m_b                         # (BB, TK, NQ) f32 VPU
        e = jnp.exp(arg.astype(e_dtype))                 # EUP (bf16 on v6e/v7x)
        # LHS rows: [a*x_j ; 1]. A single MXU matmul produces both the
        # unnormalized output (row 0) and the softmax denominator (row 1).
        ax_t = (a * xk_t).astype(e_dtype)                # (BB, TK)
        sub = lax.broadcasted_iota(jnp.int32, (bb, 2, tk), 1)
        lhs = jnp.where(sub == 0, ax_t[:, None, :], jnp.ones((), e_dtype))
        red_t = jnp.einsum("bct,bti->bci", lhs, e,
                           preferred_element_type=jnp.float32)   # (BB, 2, NQ)
        return red + red_t

    red0 = jnp.zeros((bb, 2, nq), jnp.float32)
    red = lax.fori_loop(0, n_tiles, key_tile, red0, unroll=(n_tiles <= 8))

    num = red[:, 0, :]                                   # lane-dense sublane slices
    den = red[:, 1, :]
    out = num * pl.reciprocal(den, approx=True) + bo     # divide stays O(N)
    o_ref[...] = out.astype(o_ref.dtype)


def _chip_generation():
    """Best-effort TPU generation from device_kind; 0 if unknown."""
    try:
        kind = jax.devices()[0].device_kind.lower()
    except Exception:
        return 0
    for g in (7, 6, 5, 4, 3):
        if f"v{g}" in kind or f"tpu{g}" in kind:
            return g
    return 0


def _physical_vmem_bytes(gen):
    try:
        return int(pltpu.get_tpu_info().vmem_capacity_bytes)
    except Exception:
        # v7x has 64 MiB per TensorCore; v5e/v6e have 128 MiB. Unknown -> 64.
        return (128 if gen in (5, 6) else 64) * 1024 * 1024


def self_attention_layer(x, wq, wk, wv, wo, bo, scale):
    """x: (B, 1, H, W) fp32 NCHW. Returns (B, 1, H, W) fp32."""
    b, ch, h, w = x.shape
    assert ch == 1, "module's to_qkv is Conv2d(1, 3, 1): input must have 1 channel"
    n = h * w
    x_flat = x.reshape(b, n).astype(jnp.float32)

    # Fold the 1x1-conv scalars on the host (fewer N^2 VPU passes in-kernel).
    wq_f = jnp.asarray(wq, jnp.float32)
    wk_f = jnp.asarray(wk, jnp.float32)
    wv_f = jnp.asarray(wv, jnp.float32)
    wo_f = jnp.asarray(wo, jnp.float32)
    bo_f = jnp.asarray(bo, jnp.float32)
    sc_f = jnp.asarray(scale, jnp.float32)
    params = jnp.stack([wq_f * wk_f * sc_f, wv_f * wo_f, bo_f])   # [c, a, bo]

    gen = _chip_generation()
    num_tc = 2 if gen >= 7 else 1        # v7x: 2 TensorCores per chip
    use_bf16 = gen >= 6                  # bf16 EUP/MXU path on v6e & v7x only

    # Batch blocking: sublane-dense (<=8, N) blocks. Only split the batch for
    # megacore parallelism on multi-TensorCore chips (v7x); on v5e/v6e a split
    # just wastes sublanes and adds ~0.35us/step grid overhead.
    if num_tc == 1 or b == 1:
        block_b = min(8, b)
    else:
        block_b = min(8, max(1, b // num_tc))
    num_b_blocks = pl.cdiv(b, block_b)
    b_pad = num_b_blocks * block_b
    if b_pad != b:
        x_flat = jnp.pad(x_flat, ((0, b_pad - b), (0, 0)))

    # Query-axis grid split: if a multi-TC chip would otherwise see fewer grid
    # steps than TensorCores (e.g. B == 1 on v7x), split query rows across a
    # second "parallel" grid axis so both cores get work.
    num_q_blocks = 1
    if num_tc > 1 and num_b_blocks < num_tc and n % (128 * num_tc) == 0:
        num_q_blocks = num_tc
    nq = n // num_q_blocks

    def run(e_dtype):
        esize = 2 if e_dtype == jnp.bfloat16 else 4

        # Key-tile size: a multiple of 128 dividing N, capped at 512 and then
        # shrunk until the per-tile exp block (f32 arg + e_dtype e) fits a
        # comfortable budget.
        tile_budget = 8 * 1024 * 1024
        tk = n
        if n % 128 == 0:
            def can_halve(t):
                return t % 2 == 0 and (t // 2) % 128 == 0
            while tk > 512 and can_halve(tk):
                tk //= 2
            while block_b * tk * nq * (esize + 4) > tile_budget and can_halve(tk):
                tk //= 2
        # TODO(synk): for very large H*W (block_b*128*nq still over budget),
        # additionally shrink block_b / tile the query axis inside the kernel.

        # VMEM limit from the real tiled working set (x2 headroom for the
        # double-buffered pipeline), capped at 75% of this chip's VMEM.
        work = (
            2 * block_b * n * 4          # key rows block, double-buffered
            + 2 * block_b * nq * 4       # query slice block, double-buffered
            + 2 * block_b * nq * 4       # output tile, double-buffered
            + block_b * tk * nq * 4      # f32 exp argument tile
            + block_b * tk * nq * esize  # exp tile fed to the MXU
            + block_b * 2 * tk * esize   # [a*x ; 1] LHS tile
            + block_b * 2 * nq * 4       # f32 accumulator carry
        )
        vmem_limit = int(min(int(0.75 * _physical_vmem_bytes(gen)),
                             max(16 * 1024 * 1024, 2 * work)))

        kernel = functools.partial(_self_attn_kernel, tk=tk, e_dtype=e_dtype)
        return pl.pallas_call(
            kernel,
            out_shape=jax.ShapeDtypeStruct((b_pad, n), jnp.float32),
            grid_spec=pl.GridSpec(
                grid=(num_b_blocks, num_q_blocks),
                in_specs=[
                    pl.BlockSpec(memory_space=pltpu.SMEM),             # scalars
                    pl.BlockSpec((block_b, n), lambda i, q: (i, 0)),   # keys
                    pl.BlockSpec((block_b, nq), lambda i, q: (i, q)),  # queries
                ],
                out_specs=pl.BlockSpec((block_b, nq), lambda i, q: (i, q)),
            ),
            compiler_params=pltpu.CompilerParams(
                dimension_semantics=("parallel", "parallel"),
                vmem_limit_bytes=vmem_limit),
        )(params, x_flat, x_flat)

    if use_bf16:
        try:
            out_flat = run(jnp.bfloat16)
        except Exception:
            # Toolchain/chip without the bf16 exp/MXU path: fall back to f32.
            out_flat = run(jnp.float32)
    else:
        out_flat = run(jnp.float32)

    return out_flat[:b].reshape(b, 1, h, w)


def _reference(x, wq, wk, wv, wo, bo, scale):
    """Pure-JAX reproduction of the PyTorch forward, for verification."""
    b, c, h, w = x.shape
    n = h * w
    xf = x.reshape(b, n)
    q = (xf * wq)[:, :, None]           # (b, n, 1)
    k = (xf * wk)[:, None, :]           # (b, 1, n)
    v = (xf * wv)[:, :, None]           # (b, n, 1)
    attn = jnp.matmul(q, k) * scale     # (b, n, n)
    attn = jax.nn.softmax(attn, axis=-1)
    out = jnp.matmul(attn, v)[..., 0]   # (b, n)
    out = out * wo + bo
    return out.reshape(b, 1, h, w)


if __name__ == "__main__":
    key = jax.random.PRNGKey(0)
    kx, kqkv, kow, kob = jax.random.split(key, 4)

    # Module requires 1 input channel (Conv2d(1, 3, ...)).
    B, C, H, W = 2, 1, 16, 16
    dim = 32
    scale = float(dim) ** (-0.5)

    x = jax.random.normal(kx, (B, C, H, W), dtype=jnp.float32)

    # Deterministic synthetic parameters:
    # to_qkv.weight: (3, 1, 1, 1) -> three scalars (no bias)
    qkv_w = jax.random.normal(kqkv, (3,), dtype=jnp.float32) * 0.5
    # to_out.weight: (1, 1, 1, 1), to_out.bias: (1,)
    out_w = jax.random.normal(kow, (), dtype=jnp.float32) * 0.5
    out_b = jax.random.normal(kob, (), dtype=jnp.float32) * 0.1

    y = self_attention_layer(x, qkv_w[0], qkv_w[1], qkv_w[2], out_w, out_b, scale)
    y = jax.block_until_ready(y)

    y_ref = _reference(x, qkv_w[0], qkv_w[1], qkv_w[2], out_w, out_b, scale)
    assert y.shape == (B, 1, H, W)
    # Tolerance covers the approximate EUP reciprocal (~2^-12 rel) plus, on
    # v6e/v7x, the bf16 exp / bf16 MXU-operand rounding (~2^-9 rel per term,
    # f32 accumulation); the math is otherwise exact vs the reference.
    assert jnp.allclose(y, y_ref, atol=3e-3, rtol=3e-3), "mismatch vs reference"

    print("KERNEL_OK")
</pallas_src>

<mosaic_0001>
module attributes {stable_mosaic.version = 11 : i64} {
  func.func @_self_attn_kernel(%arg0: i32, %arg1: i32, %arg2: memref<3xf32, #tpu.memory_space<smem>>, %arg3: memref<2x256xf32, #tpu.memory_space<vmem>>, %arg4: memref<2x256xf32, #tpu.memory_space<vmem>>, %arg5: memref<2x256xf32, #tpu.memory_space<vmem>>) attributes {dimension_semantics = [#tpu.dimension_semantics<parallel>, #tpu.dimension_semantics<parallel>], iteration_bounds = array<i64: 1, 1>, scalar_prefetch = 0 : i64, scratch_operands = 0 : i64, tpu.core_type = #tpu.core_type<tc>, window_params = [{transform_indices = @transform_0, window_bounds = array<i64: 3>}, {transform_indices = @transform_1, window_bounds = array<i64: 2, 256>}, {transform_indices = @transform_2, window_bounds = array<i64: 2, 256>}, {transform_indices = @transform_3, window_bounds = array<i64: 2, 256>}]} {
    %c0 = arith.constant 0 : index
    %0 = memref.load %arg2[%c0] : memref<3xf32, #tpu.memory_space<smem>>
    %c1 = arith.constant 1 : index
    %1 = memref.load %arg2[%c1] : memref<3xf32, #tpu.memory_space<smem>>
    %c2 = arith.constant 2 : index
    %2 = memref.load %arg2[%c2] : memref<3xf32, #tpu.memory_space<smem>>
    %c0_0 = arith.constant 0 : index
    %c0_1 = arith.constant 0 : index
    %3 = vector.load %arg3[%c0_0, %c0_1] : memref<2x256xf32, #tpu.memory_space<vmem>>, vector<2x256xf32>
    %c0_2 = arith.constant 0 : index
    %c0_3 = arith.constant 0 : index
    %4 = vector.load %arg4[%c0_2, %c0_3] : memref<2x256xf32, #tpu.memory_space<vmem>>, vector<2x256xf32>
    %5 = vector.broadcast %0 : f32 to vector<2x256xf32>
    %6 = arith.mulf %5, %3 : vector<2x256xf32>
    %cst = arith.constant dense<0xFF800000> : vector<2xf32>
    %7 = vector.multi_reduction <maximumf>, %6, %cst [1] : vector<2x256xf32> to vector<2xf32>
    %8 = vector.shape_cast %7 : vector<2xf32> to vector<2x1xf32>
    %cst_4 = arith.constant dense<0x7F800000> : vector<2xf32>
    %9 = vector.multi_reduction <minimumf>, %6, %cst_4 [1] : vector<2x256xf32> to vector<2xf32>
    %10 = vector.shape_cast %9 : vector<2xf32> to vector<2x1xf32>
    %11 = vector.broadcast %8 : vector<2x1xf32> to vector<2x256xf32>
    %12 = arith.mulf %4, %11 : vector<2x256xf32>
    %13 = vector.broadcast %10 : vector<2x1xf32> to vector<2x256xf32>
    %14 = arith.mulf %4, %13 : vector<2x256xf32>
    %15 = arith.maximumf %12, %14 : vector<2x256xf32>
    %16 = vector.shape_cast %15 : vector<2x256xf32> to vector<2x1x256xf32>
    %17 = vector.shape_cast %4 : vector<2x256xf32> to vector<2x1x256xf32>
    %cst_5 = arith.constant 0.000000e+00 : f32
    %18 = vector.broadcast %cst_5 : f32 to vector<2x2x256xf32>
    %c0_i32 = arith.constant 0 : i32
    %c256_i32 = arith.constant 256 : i32
    %19 = arith.muli %c0_i32, %c256_i32 : i32
    %20 = tpu.assume_multiple %19, 256 : i32
    %c0_6 = arith.constant 0 : index
    %21 = arith.index_cast %20 : i32 to index
    %22 = vector.load %arg3[%c0_6, %21] : memref<2x256xf32, #tpu.memory_space<vmem>>, vector<2x256xf32>
    %23 = vector.broadcast %0 : f32 to vector<2x256xf32>
    %24 = arith.mulf %23, %22 : vector<2x256xf32>
    %25 = vector.shape_cast %24 : vector<2x256xf32> to vector<2x256x1xf32>
    %26 = vector.broadcast %25 : vector<2x256x1xf32> to vector<2x256x256xf32>
    %27 = vector.broadcast %17 : vector<2x1x256xf32> to vector<2x256x256xf32>
    %28 = arith.mulf %26, %27 : vector<2x256x256xf32>
    %29 = vector.broadcast %16 : vector<2x1x256xf32> to vector<2x256x256xf32>
    %30 = arith.subf %28, %29 : vector<2x256x256xf32>
    %31 = math.exp %30 : vector<2x256x256xf32>
    %32 = vector.broadcast %1 : f32 to vector<2x256xf32>
    %33 = arith.mulf %32, %22 : vector<2x256xf32>
    %34 = tpu.iota {dimensions = array<i32: 1>} : vector<2x2x256xi32>
    %c0_i32_7 = arith.constant 0 : i32
    %35 = vector.broadcast %c0_i32_7 : i32 to vector<2x2x256xi32>
    %36 = arith.cmpi eq, %34, %35 : vector<2x2x256xi32>
    %37 = vector.shape_cast %33 : vector<2x256xf32> to vector<2x1x256xf32>
    %cst_8 = arith.constant 1.000000e+00 : f32
    %38 = vector.shape_cast %37 : vector<2x1x256xf32> to vector<2x1x256xf32>
    %39 = vector.broadcast %38 : vector<2x1x256xf32> to vector<2x2x256xf32>
    %40 = vector.broadcast %cst_8 : f32 to vector<2x2x256xf32>
    %41 = arith.select %36, %39, %40 : vector<2x2x256xi1>, vector<2x2x256xf32>
    "tpu.trace_start"() <{level = 10 : i32, message = "bct,bti->bci"}> : () -> ()
    %cst_9 = arith.constant dense<0.000000e+00> : vector<2x2x256xf32>
    %42 = tpu.matmul %41, %31, %cst_9 {dimension_numbers = #tpu.dot_dimension_numbers<[2], [1], [1], [2], [0, 0, 0, 1, 1, 2], [0], [0]>} : vector<2x2x256xf32>, vector<2x256x256xf32>, vector<2x2x256xf32> -> vector<2x2x256xf32>
    "tpu.trace_stop"() : () -> ()
    %43 = arith.addf %18, %42 : vector<2x2x256xf32>
    %c1_i32 = arith.constant 1 : i32
    %44 = vector.extract_strided_slice %43 {offsets = [0, 0, 0], sizes = [2, 1, 256], strides = [1, 1, 1]} : vector<2x2x256xf32> to vector<2x1x256xf32>
    %45 = vector.shape_cast %44 : vector<2x1x256xf32> to vector<2x256xf32>
    %46 = vector.extract_strided_slice %43 {offsets = [0, 1, 0], sizes = [2, 1, 256], strides = [1, 1, 1]} : vector<2x2x256xf32> to vector<2x1x256xf32>
    %47 = vector.shape_cast %46 : vector<2x1x256xf32> to vector<2x256xf32>
    %48 = tpu.reciprocal %47 {approx = true} : vector<2x256xf32> -> vector<2x256xf32>
    %49 = arith.mulf %45, %48 : vector<2x256xf32>
    %50 = vector.broadcast %2 : f32 to vector<2x256xf32>
    %51 = arith.addf %49, %50 : vector<2x256xf32>
    %c0_10 = arith.constant 0 : index
    %c0_11 = arith.constant 0 : index
    %52 = vector.load %arg5[%c0_10, %c0_11] : memref<2x256xf32, #tpu.memory_space<vmem>>, vector<2x256xf32>
    tpu.vector_store %arg5[%c0_10, %c0_11], %51 {strides = array<i32>} : memref<2x256xf32, #tpu.memory_space<vmem>>, vector<2x256xf32>,
    return
  }
  func.func @transform_0(%arg0: i32, %arg1: i32) -> i32 {
    %c0_i32 = arith.constant 0 : i32
    %c0_i32_0 = arith.constant 0 : i32
    return %c0_i32 : i32
  }
  func.func @transform_1(%arg0: i32, %arg1: i32) -> (i32, i32) {
    %c0_i32 = arith.constant 0 : i32
    %c0_i32_0 = arith.constant 0 : i32
    return %arg0, %c0_i32 : i32, i32
  }
  func.func @transform_2(%arg0: i32, %arg1: i32) -> (i32, i32) {
    %c0_i32 = arith.constant 0 : i32
    return %arg0, %arg1 : i32, i32
  }
  func.func @transform_3(%arg0: i32, %arg1: i32) -> (i32, i32) {
    %c0_i32 = arith.constant 0 : i32
    return %arg0, %arg1 : i32, i32
  }
}

</mosaic_0001>

<bundles_post_ra>
// kernel: tpu_custom_call.1
= control target key start
LH: loop header
LB: loop body
LE: loop exit
PB: predicated region body
PF: predicated region fallthrough
CT: control target
= control target key end

     0   :  { %8 = vsyncpa [#allocation5], 0  ;;  %s2570_s0 = inlined_call_operand.hbm [shape: f32[3], index: 0, kind: input, shape index: {}]   ;;  %s2571_s1 = inlined_call_operand.hbm [shape: f32[2,256], index: 1, kind: input, shape index: {}]   ;;  %s2572_s2 = inlined_call_operand.vmem [shape: f32[2,256], index: 2, kind: input, shape index: {}]   ;;  %s2573_s3 = inlined_call_operand.hbm [shape: f32[2,256], index: 3, kind: output, shape index: {}]  }
   0x1   :  { %9 = vsyncpa [#allocation3], 0 }
   0x2   :  { %10 = vsyncpa [#allocation4], 0  ;;  %s1596_s14 = scalar_lea.hbm %s2570_s0, 16 }
   0x3   :  { %p1597_p0 = scmp.ne.s32.totalorder %s2570_s0, %s1596_s14  ;;  %p1600_p1 = scmp.lt.u32.totalorder %s1596_s14, %s2570_s0 }
   0x5   :  { %p1602_p2 = pnand %p1600_p1, %p1597_p0 }
   0x7   :  { %1605 = shalt.err (!%p1602_p2)
}
   0x8   :  { %s1656_s19 = smov [#allocation2]   ;;  %s1657_s22 = smov [#allocation6]  }
   0x9   :  { %18 = dma.hbm_to_smem %s2570_s0, 16, %s1656_s19, [#allocation5]  }
   0xa   :  { %s25_s23 = sshll.u32 %s1657_s22, 4  ;;  %s1606_s26 = scalar_lea.hbm %s2571_s1, 64  ;;  %s26_s23 = int_to_ptr.vmem [resolvable:$true] %s25_s23 }
   0xb   :  { %p1607_p3 = scmp.ne.s32.totalorder %s2571_s1, %s1606_s26  ;;  %p1610_p4 = scmp.lt.u32.totalorder %s1606_s26, %s2571_s1 }
   0xd   :  { %p1612_p5 = pnand %p1610_p4, %p1607_p3 }
   0xf   :  { %1615 = shalt.err (!%p1612_p5)
}
  0x10   :  { %s1616_s4 = scalar_lea.vmem %s26_s23, 64  ;;  %p1621_p7 = scmp.lt.s32.totalorder %s26_s23, %s26_s23 }
  0x11   :  { %p1617_p6 = scmp.ne.s32.totalorder %s26_s23, %s1616_s4  ;;  %p1622_p8 = scmp.lt.s32.totalorder %s1616_s4, %s1616_s4 }
  0x13   :  { %p1623_p9 = por %p1622_p8, %p1621_p7 }
  0x15   :  { %p1624_p10 = pnand %p1623_p9, %p1617_p6 }
  0x17   :  { %1627 = shalt.err (!%p1624_p10)
}
  0x18   :  { %28 = dma.hbm_to_vmem [thread:$0]  %s2571_s1, 64, %s26_s23, [#allocation3]  }
  0x19   :  { %1650 = dma.done.wait [#allocation5], 16  }
  0x1a   :  { %1651 = vsyncadd [#allocation5], 4294967280 }
  0x1b   :  { %1652 = dma.done.wait [#allocation3], 64  }
  0x1c   :  { %1653 = vsyncadd [#allocation3], 4294967232 }
  0x1d   :  { %37 = sfence }
  0x1e   :  { %s38_s6 = sld [smem:[#allocation2]]  ;;  %v49_v0 = vlaneseq  ;;  %v1658_v1 = vmov 1983009808   ;;  %v106_v5 = vld [vmem:[#allocation6] sm:$0xf]  ;;  %vm56_vm0 = vcmask 1041408  }
  0x1f   :  { %v47_v2 = vunpack.c.l.s4 %v1658_v1  ;;  %v41_v6 = vld [vmem:[#allocation6] sm:$0xf]  ;;  %v1659_v30 = vmov 1966171168   ;;  %v42_v37 = vld [vmem:[%s2572_s2] sm:$0xf] }
  0x20   :  { %v1706_v3 = vshrl.u32 %v49_v0, 7  ;;  %v90_v31 = vunpack.c.l.s4 %v1659_v30  ;;  %v1660_v38 = vmov 269488144   ;;  %s2509_s2 = sld [smem:[#allocation2 + $0x1]]  ;;  %s1196_s8 = sld [smem:[#allocation2 + $0x2]]  ;;  %vm1169_vm2 = vcmask 1041409  }
  0x21   :  { %v48_v4 = vunpack.c.0.s8 %v47_v2  ;;  %v69_v39 = vunpack.c.l.s4 %v1660_v38  ;;  %vm1171_vm3 = vcmask 1043459   ;;  %vm1173_vm4 = vcmask 1045509   ;;  %s1661_s9 = smov [#allocation7]  }
  0x22   :  { %2582 = vst [vmem:[#allocation11_spill] sm:$0xff] %v1706_v3  ;;  %v1712_v10 = vsub.s32 1, %v1706_v3  ;;  %v1718_v20 = vsub.s32 0, %v1706_v3  ;;  %v91_v33 = vunpack.c.0.s8 %v90_v31  ;;  %s1185_s10 = sshll.u32 %s1661_s9, 4  ;;  %vm1175_vm5 = vcmask 1047559   ;;  %s1186_s10 = int_to_ptr.vmem [resolvable:$true] %s1185_s10 }
  0x23   :  { %v1709_v7 = vsub.s32 %v48_v4, %v1706_v3  ;;  %v70_v42 = vunpack.c.0.s8 %v69_v39  ;;  %s1628_s11 = scalar_lea.vmem %s1186_s10, 64  ;;  %p1633_p12 = scmp.lt.s32.totalorder %s1186_s10, %s1186_s10 }
  0x24   :  { %v43_v8 = vstv %s38_s6  ;;  %2584 = vst [vmem:[#allocation13_spill] sm:$0xff] %v1712_v10  ;;  %2585 = vst [vmem:[#allocation14_spill] sm:$0xff] %v1718_v20  ;;  %v1724_v35 = vsub.s32 %v91_v33, %v1706_v3  ;;  %p1629_p11 = scmp.ne.s32.totalorder %s1186_s10, %s1628_s11  ;;  %p1634_p13 = scmp.lt.s32.totalorder %s1628_s11, %s1628_s11 }
  0x25   :  { %2583 = vst [vmem:[#allocation12_spill] sm:$0xff] %v1709_v7  ;;  %v107_v9 = vmul.f32 %v106_v5, %v43_v8  ;;  %v44_v11 = vmul.f32 %v43_v8, %v41_v6  ;;  %v73_v45 = vsub.s32 %v70_v42, %v1706_v3 }
  0x26   :  { %v104_v40 = vrot.slane %v42_v37, %v1724_v35  ;;  %p1635_p0 = por %p1634_p13, %p1633_p12 }
  0x27   :  { %v115_v12 = vrot.slane %v107_v9, %v1709_v7  ;;  %v52_v13 = vrot.slane %v44_v11, %v1709_v7 }
  0x28   :  { %v105_v43 = vcombine.high %v104_v40, %v104_v40  ;;  %v1738_v51 = vrot.slane %v104_v40, %v1718_v20  ;;  %v1741_v52 = vrot.slane %v104_v40, %v1712_v10  ;;  %p1636_p1 = pnand %p1635_p0, %p1629_p11 }
  0x29   :  { %v256_v14 = vrot.slane %v115_v12, %v1712_v10  ;;  %v53_v15 = vcombine.high %v52_v13, %v52_v13  ;;  %v57_v16 = vsel %vm56_vm0, %v52_v13, -inf  ;;  %v62_v18 = vsel %vm56_vm0, %v52_v13, inf }
  0x2a   :  { %v122_v23 = vrot.slane %v115_v12, %v1718_v20  ;;  %v116_v24 = vcombine.high %v115_v12, %v115_v12  ;;  %v1732_v47 = vrot.slane %v105_v43, %v1718_v20  ;;  %v1735_v49 = vrot.slane %v105_v43, %v1712_v10 }
  0x2b   :  { %258 = vbcast.lane.b32.xlu1 %v256_v14, 256  ;;  %v58_v17 = vsel %vm56_vm0, %v53_v15, -inf  ;;  %v63_v19 = vsel %vm56_vm0, %v53_v15, inf }
  0x2c   :  { %v59_v21 = vmax.f32 %v57_v16, %v58_v17  ;;  %v64_v22 = vmin.f32 %v62_v18, %v63_v19  ;;  %v323_v25 = vrot.slane %v116_v24, %v1712_v10  ;;  %v189_v26 = vrot.slane %v116_v24, %v1718_v20 }
  0x2e   :  { %60 = vmax.xlane.f32.xlu0 %v59_v21 }
  0x2f   :  { %262 = vbcast.lane.b32.xlu1 %v256_v14, 264 }
  0x32   :  { %65 = vmin.xlane.f32.xlu0 %v64_v22 }
  0x33   :  { %128 = vbcast.lane.b32.xlu1 %v122_v23, 264 }
  0x37   :  { %266 = vbcast.lane.b32.xlu1 %v256_v14, 272 }
  0x3b   :  { %270 = vbcast.lane.b32.xlu1 %v256_v14, 280 }
  0x3f   :  { %132 = vbcast.lane.b32.xlu1 %v122_v23, 272 }
  0x43   :  { %136 = vbcast.lane.b32.xlu1 %v122_v23, 280 }
  0x47   :  { %274 = vbcast.lane.b32.xlu1 %v256_v14, 288 }
  0x48   :  { %124 = vbcast.lane.b32.xlu0 %v122_v23, 256 }
  0x4b   :  { %140 = vbcast.lane.b32.xlu1 %v122_v23, 288 }
  0x4c   :  { %278 = vbcast.lane.b32.xlu0 %v256_v14, 296 }
  0x4f   :  { %282 = vbcast.lane.b32.xlu1 %v256_v14, 304 }
  0x50   :  { %144 = vbcast.lane.b32.xlu0 %v122_v23, 296 }
  0x53   :  { %148 = vbcast.lane.b32.xlu1 %v122_v23, 304 }
  0x54   :  { %286 = vbcast.lane.b32.xlu0 %v256_v14, 312 }
  0x57   :  { %290 = vbcast.lane.b32.xlu1 %v256_v14, 320 }
  0x58   :  { %152 = vbcast.lane.b32.xlu0 %v122_v23, 312 }
  0x5b   :  { %156 = vbcast.lane.b32.xlu1 %v122_v23, 320 }
  0x5c   :  { %294 = vbcast.lane.b32.xlu0 %v256_v14, 328 }
  0x5f   :  { %298 = vbcast.lane.b32.xlu1 %v256_v14, 336 }
  0x60   :  { %160 = vbcast.lane.b32.xlu0 %v122_v23, 328 }
  0x63   :  { %164 = vbcast.lane.b32.xlu1 %v122_v23, 336 }
  0x64   :  { %302 = vbcast.lane.b32.xlu0 %v256_v14, 344 }
  0x67   :  { %306 = vbcast.lane.b32.xlu1 %v256_v14, 352 }
  0x68   :  { %168 = vbcast.lane.b32.xlu0 %v122_v23, 344 }
  0x6b   :  { %172 = vbcast.lane.b32.xlu1 %v122_v23, 352 }
  0x6c   :  { %310 = vbcast.lane.b32.xlu0 %v256_v14, 360 }
  0x6f   :  { %314 = vbcast.lane.b32.xlu1 %v256_v14, 368 }
  0x70   :  { %176 = vbcast.lane.b32.xlu0 %v122_v23, 360 }
  0x73   :  { %180 = vbcast.lane.b32.xlu1 %v122_v23, 368 }
  0x74   :  { %318 = vbcast.lane.b32.xlu0 %v256_v14, 376 }
  0x77   :  { %325 = vbcast.lane.b32.xlu1 %v323_v25, 256 }
  0x78   :  { %184 = vbcast.lane.b32.xlu0 %v122_v23, 376 }
  0x7b   :  { %191 = vbcast.lane.b32.xlu1 %v189_v26, 256 }
  0x7c   :  { %329 = vbcast.lane.b32.xlu0 %v323_v25, 264 }
  0x7f   :  { %333 = vbcast.lane.b32.xlu1 %v323_v25, 272 }
  0x80   :  { %195 = vbcast.lane.b32.xlu0 %v189_v26, 264 }
  0x83   :  { %199 = vbcast.lane.b32.xlu1 %v189_v26, 272 }
  0x84   :  { %337 = vbcast.lane.b32.xlu0 %v323_v25, 280 }
  0x87   :  { %341 = vbcast.lane.b32.xlu1 %v323_v25, 288 }
  0x88   :  { %203 = vbcast.lane.b32.xlu0 %v189_v26, 280 }
  0x8b   :  { %207 = vbcast.lane.b32.xlu1 %v189_v26, 288 }
  0x8c   :  { %345 = vbcast.lane.b32.xlu0 %v323_v25, 296 }
  0x8f   :  { %349 = vbcast.lane.b32.xlu1 %v323_v25, 304 }
  0x90   :  { %211 = vbcast.lane.b32.xlu0 %v189_v26, 296 }
  0x93   :  { %215 = vbcast.lane.b32.xlu1 %v189_v26, 304 }
  0x94   :  { %353 = vbcast.lane.b32.xlu0 %v323_v25, 312 }
  0x97   :  { %357 = vbcast.lane.b32.xlu1 %v323_v25, 320 }
  0x98   :  { %219 = vbcast.lane.b32.xlu0 %v189_v26, 312 }
  0x9b   :  { %223 = vbcast.lane.b32.xlu1 %v189_v26, 320 }
  0x9c   :  { %361 = vbcast.lane.b32.xlu0 %v323_v25, 328 }
  0x9d   :  { %v259_v27 = vpop.permute.xlu1 %258 }
  0x9e   :  { %v1744_v55 = vmul.f32 %v1732_v47, %v259_v27  ;;  %v1747_v57 = vmul.f32 %v1735_v49, %v259_v27 }
  0x9f   :  { %365 = vbcast.lane.b32.xlu1 %v323_v25, 336 }
  0xa0   :  { %227 = vbcast.lane.b32.xlu0 %v189_v26, 328 }
  0xa1   :  { %v263_v28 = vpop.permute.xlu1 %262 }
  0xa2   :  { %v1750_v58 = vmul.f32 %v1732_v47, %v263_v28  ;;  %v1753_v61 = vmul.f32 %v1735_v49, %v263_v28 }
  0xa3   :  { %231 = vbcast.lane.b32.xlu1 %v189_v26, 336 }
  0xa4   :  { %369 = vbcast.lane.b32.xlu0 %v323_v25, 344 }
  0xa5   :  { %v129_v29 = vpop.permute.xlu1 %128 }
  0xa6   :  { %v409_v62 = vmul.f32 %v1738_v51, %v129_v29  ;;  %v410_v63 = vmul.f32 %v1741_v52, %v129_v29 }
  0xa7   :  { %373 = vbcast.lane.b32.xlu1 %v323_v25, 352 }
  0xa8   :  { %235 = vbcast.lane.b32.xlu0 %v189_v26, 344 }
  0xa9   :  { %v267_v32 = vpop.permute.xlu1 %266 }
  0xaa   :  { %v1758_v0 = vmul.f32 %v1732_v47, %v267_v32  ;;  %v1761_v2 = vmul.f32 %v1735_v49, %v267_v32 }
  0xab   :  { %239 = vbcast.lane.b32.xlu1 %v189_v26, 352 }
  0xac   :  { %377 = vbcast.lane.b32.xlu0 %v323_v25, 360 }
  0xad   :  { %v271_v34 = vpop.permute.xlu1 %270 }
  0xae   :  { %v1764_v4 = vmul.f32 %v1732_v47, %v271_v34  ;;  %v1767_v5 = vmul.f32 %v1735_v49, %v271_v34 }
  0xaf   :  { %381 = vbcast.lane.b32.xlu1 %v323_v25, 368 }
  0xb0   :  { %243 = vbcast.lane.b32.xlu0 %v189_v26, 360 }
  0xb1   :  { %v133_v36 = vpop.permute.xlu1 %132 }
  0xb2   :  { %v411_v8 = vmul.f32 %v1738_v51, %v133_v36  ;;  %v412_v9 = vmul.f32 %v1741_v52, %v133_v36 }
  0xb3   :  { %247 = vbcast.lane.b32.xlu1 %v189_v26, 368 }
  0xb4   :  { %385 = vbcast.lane.b32.xlu0 %v323_v25, 376 }
  0xb5   :  { %v137_v41 = vpop.permute.xlu1 %136 }
  0xb6   :  { %v413_v11 = vmul.f32 %v1738_v51, %v137_v41  ;;  %v414_v12 = vmul.f32 %v1741_v52, %v137_v41 }
  0xb8   :  { %251 = vbcast.lane.b32.xlu0 %v189_v26, 376 }
  0xb9   :  { %v275_v44 = vpop.permute.xlu1 %274 }
  0xba   :  { %v1774_v14 = vmul.f32 %v1732_v47, %v275_v44  ;;  %v1777_v15 = vmul.f32 %v1735_v49, %v275_v44 }
  0xbb   :  { %v61_v46 = vpop.xlane.xlu0 %60 }
  0xbc   :  { %v74_v50 = vrot.slane %v61_v46, %v73_v45 }
  0xbd   :  { %v141_v48 = vpop.permute.xlu1 %140 }
  0xbe   :  { %v76_v59 = vmul.f32 %v74_v50, %v42_v37  ;;  %v415_v16 = vmul.f32 %v1738_v51, %v141_v48  ;;  %v416_v18 = vmul.f32 %v1741_v52, %v141_v48 }
  0xbf   :  { %v66_v53 = vpop.xlane.xlu0 %65 }
  0xc0   :  { %v84_v54 = vrot.slane %v66_v53, %v73_v45 }
  0xc1   :  { %v283_v56 = vpop.permute.xlu1 %282 }
  0xc2   :  { %v86_v60 = vmul.f32 %v84_v54, %v42_v37  ;;  %v483_v19 = vmul.f32 %v1732_v47, %v283_v56  ;;  %v484_v21 = vmul.f32 %v1735_v49, %v283_v56 }
  0xc3   :  { %v125_v1 = vpop.permute.xlu0 %124 }
  0xc4   :  { %v87_v6 = vmax.f32 %v76_v59, %v86_v60  ;;  %v1785_v22 = vmul.f32 %v1738_v51, %v125_v1  ;;  %v1794_v27 = vmul.f32 %v1741_v52, %v125_v1 }
  0xc5   :  { %v149_v13 = vpop.permute.xlu1 %148 }
  0xc6   :  { %v95_v17 = vrot.slane %v87_v6, %v1724_v35  ;;  %v1797_v28 = vmul.f32 %v1738_v51, %v149_v13  ;;  %v1800_v29 = vmul.f32 %v1741_v52, %v149_v13 }
  0xc7   :  { %v279_v23 = vpop.permute.xlu0 %278 }
  0xc8   :  { %v96_v24 = vcombine.high %v95_v17, %v95_v17  ;;  %v1788_v25 = vrot.slane %v95_v17, %v1718_v20  ;;  %v1791_v26 = vrot.slane %v95_v17, %v1712_v10  ;;  %v1803_v30 = vmul.f32 %v1732_v47, %v279_v23 }
  0xc9   :  { %v1806_v31 = vmul.f32 %v1735_v49, %v279_v23  ;;  %v1808_v32 = vpop.permute.xlu1 %290 }
  0xca   :  { %v1811_v33 = vrot.slane %v96_v24, %v1718_v20  ;;  %v1814_v34 = vrot.slane %v96_v24, %v1712_v10  ;;  %v557_v36 = vsub.f32 %v409_v62, %v1788_v25  ;;  %v558_v37 = vsub.f32 %v410_v63, %v1791_v26 }
  0xcb   :  { %v559_v38 = vsub.f32 %v411_v8, %v1788_v25  ;;  %v560_v39 = vsub.f32 %v412_v9, %v1791_v26  ;;  %v561_v40 = vsub.f32 %v413_v11, %v1788_v25  ;;  %v562_v41 = vsub.f32 %v414_v12, %v1791_v26  ;;  %v1822_v42 = vpop.permute.xlu0 %144 }
  0xcc   :  { %v563_v43 = vsub.f32 %v415_v16, %v1788_v25  ;;  %v564_v44 = vsub.f32 %v416_v18, %v1791_v26  ;;  %v619_v45 = vsub.f32 %v1744_v55, %v1811_v33  ;;  %v620_v46 = vsub.f32 %v1747_v57, %v1814_v34 }
  0xcd   :  { %v621_v48 = vsub.f32 %v1750_v58, %v1811_v33  ;;  %v622_v50 = vsub.f32 %v1753_v61, %v1814_v34  ;;  %v623_v53 = vsub.f32 %v1758_v0, %v1811_v33  ;;  %v624_v54 = vsub.f32 %v1761_v2, %v1814_v34  ;;  %v1838_v56 = vpop.permute.xlu1 %156 }
  0xce   :  { %v625_v55 = vsub.f32 %v1764_v4, %v1811_v33  ;;  %v626_v57 = vsub.f32 %v1767_v5, %v1814_v34  ;;  %v627_v58 = vsub.f32 %v1774_v14, %v1811_v33  ;;  %v628_v59 = vsub.f32 %v1777_v15, %v1814_v34 }
  0xcf   :  { %v631_v60 = vsub.f32 %v483_v19, %v1811_v33  ;;  %v632_v61 = vsub.f32 %v484_v21, %v1814_v34  ;;  %v687_v62 = vmul.f32 1.442695, %v557_v36  ;;  %v689_v63 = vmul.f32 1.442695, %v558_v37  ;;  %v1850_v0 = vpop.permute.xlu0 %286 }
  0xd0   :  { %v691_v1 = vmul.f32 1.442695, %v559_v38  ;;  %v693_v2 = vmul.f32 1.442695, %v560_v39  ;;  %v695_v4 = vmul.f32 1.442695, %v561_v40  ;;  %v555_v5 = vsub.f32 %v1785_v22, %v1788_v25 }
  0xd1   :  { %v835_v6 = vmul.f32 1.442695, %v631_v60  ;;  %v837_v8 = vmul.f32 1.442695, %v632_v61  ;;  %v697_v9 = vmul.f32 1.442695, %v562_v41  ;;  %1331 = vpow2.f32 %v687_v62  ;;  %v1854_v11 = vpop.permute.xlu1 %298 }
  0xd2   :  { %v699_v12 = vmul.f32 1.442695, %v563_v43  ;;  %v701_v13 = vmul.f32 1.442695, %v564_v44  ;;  %v811_v14 = vmul.f32 1.442695, %v619_v45  ;;  %1333 = vpow2.f32 %v689_v63 }
  0xd3   :  { %1335 = vpow2.f32 %v835_v6  ;;  %v813_v15 = vmul.f32 1.442695, %v620_v46  ;;  %v815_v16 = vmul.f32 1.442695, %v621_v48  ;;  %v817_v17 = vmul.f32 1.442695, %v622_v50  ;;  %v1856_v18 = vpop.permute.xlu0 %152 }
  0xd4   :  { %1337 = vpow2.f32 %v837_v8  ;;  %v819_v19 = vmul.f32 1.442695, %v623_v53  ;;  %v821_v21 = vmul.f32 1.442695, %v624_v54  ;;  %v823_v22 = vmul.f32 1.442695, %v625_v55 }
  0xd5   :  { %v1858_v23 = vmul.f32 1.442695, %v626_v57  ;;  %v1860_v24 = vmul.f32 1.442695, %v627_v58  ;;  %v1862_v36 = vmul.f32 1.442695, %v628_v59  ;;  %1339 = vpow2.f32 %v691_v1  ;;  %v1864_v37 = vpop.permute.xlu1 %164 }
  0xd6   :  { %1341 = vpow2.f32 %v693_v2  ;;  %v556_v38 = vsub.f32 %v1794_v27, %v1791_v26  ;;  %v1868_v39 = vmul.f32 1.442695, %v555_v5  ;;  %v567_v40 = vsub.f32 %v1797_v28, %v1788_v25 }
  0xd7   :  { %1343 = vpow2.f32 %v695_v4  ;;  %v568_v41 = vsub.f32 %v1800_v29, %v1791_v26  ;;  %v629_v43 = vsub.f32 %v1803_v30, %v1811_v33  ;;  %v630_v44 = vsub.f32 %v1806_v31, %v1814_v34  ;;  %v1878_v45 = vpop.permute.xlu0 %294 }
  0xd8   :  { %1345 = vpow2.f32 %v697_v9  ;;  %v1880_v46 = vmul.f32 1.442695, %v556_v38  ;;  %v1882_v27 = vmul.f32 1.442695, %v567_v40  ;;  %v487_v28 = vmul.f32 %v1732_v47, %v1808_v32 }
  0xd9   :  { %1347 = vpow2.f32 %v699_v12  ;;  %v1886_v48 = vmul.f32 1.442695, %v568_v41  ;;  %v1888_v29 = vmul.f32 1.442695, %v629_v43  ;;  %v1890_v50 = vmul.f32 1.442695, %v630_v44  ;;  %v1892_v30 = vpop.permute.xlu1 %306 }
  0xda   :  { %1349 = vpow2.f32 %v701_v13  ;;  %v488_v31 = vmul.f32 %v1735_v49, %v1808_v32  ;;  %v635_v53 = vsub.f32 %v487_v28, %v1811_v33  ;;  %v417_v54 = vmul.f32 %v1738_v51, %v1822_v42 }
  0xdb   :  { %v1899_v55 = vpop.eup %1331  ;;  %1351 = vpow2.f32 %v811_v14  ;;  %v418_v57 = vmul.f32 %v1741_v52, %v1822_v42  ;;  %v423_v58 = vmul.f32 %v1738_v51, %v1838_v56  ;;  %v424_v59 = vmul.f32 %v1741_v52, %v1838_v56  ;;  %v1907_v60 = vpop.permute.xlu0 %160 }
  0xdc   :  { %v1909_v32 = vpop.eup %1333  ;;  %1353 = vpow2.f32 %v813_v15  ;;  %v636_v61 = vsub.f32 %v488_v31, %v1814_v34  ;;  %v1912_v62 = vmul.f32 1.442695, %v635_v53  ;;  %v565_v63 = vsub.f32 %v417_v54, %v1788_v25 }
  0xdd   :  { %v1915_v1 = vpop.eup %1335  ;;  %1355 = vpow2.f32 %v815_v16  ;;  %v566_v42 = vsub.f32 %v418_v57, %v1791_v26  ;;  %v571_v2 = vsub.f32 %v423_v58, %v1788_v25  ;;  %v572_v56 = vsub.f32 %v424_v59, %v1791_v26  ;;  %v1920_v4 = vpop.permute.xlu1 %172 }
  0xde   :  { %v1922_v5 = vpop.eup %1337  ;;  %1357 = vpow2.f32 %v817_v17  ;;  %v1924_v6 = vmul.f32 1.442695, %v636_v61  ;;  %v1926_v8 = vmul.f32 1.442695, %v565_v63  ;;  %v485_v9 = vmul.f32 %v1732_v47, %v1850_v0 }
  0xdf   :  { %v1930_v12 = vpop.eup %1339  ;;  %1359 = vpow2.f32 %v819_v19  ;;  %v1932_v13 = vmul.f32 1.442695, %v566_v42  ;;  %v1934_v14 = vmul.f32 1.442695, %v571_v2  ;;  %v1936_v15 = vmul.f32 1.442695, %v572_v56  ;;  %v1938_v16 = vpop.permute.xlu0 %302 }
  0xe0   :  { %v1940_v38 = vpop.eup %1341  ;;  %1361 = vpow2.f32 %v821_v21  ;;  %v486_v17 = vmul.f32 %v1735_v49, %v1850_v0  ;;  %v633_v40 = vsub.f32 %v485_v9, %v1811_v33  ;;  %v491_v41 = vmul.f32 %v1732_v47, %v1854_v11 }
  0xe1   :  { %v1947_v19 = vpop.eup %1343  ;;  %1363 = vpow2.f32 %v823_v22  ;;  %v492_v43 = vmul.f32 %v1735_v49, %v1854_v11  ;;  %v421_v44 = vmul.f32 %v1738_v51, %v1856_v18  ;;  %v422_v21 = vmul.f32 %v1741_v52, %v1856_v18  ;;  %v1955_v28 = vpop.permute.xlu1 %314 }
  0xe2   :  { %v1957_v0 = vpop.eup %1345  ;;  %1365 = vpow2.f32 %v1858_v23  ;;  %v634_v31 = vsub.f32 %v486_v17, %v1814_v34  ;;  %v1961_v53 = vmul.f32 1.442695, %v633_v40  ;;  %v639_v22 = vsub.f32 %v491_v41, %v1811_v33 }
  0xe3   :  { %v1964_v54 = vpop.eup %1347  ;;  %1367 = vpow2.f32 %v1860_v24  ;;  %v640_v11 = vsub.f32 %v492_v43, %v1814_v34  ;;  %v569_v18 = vsub.f32 %v421_v44, %v1788_v25  ;;  %v570_v57 = vsub.f32 %v422_v21, %v1791_v26  ;;  %v1970_v58 = vpop.permute.xlu0 %168 }
  0xe4   :  { %v1972_v59 = vpop.eup %1349  ;;  %1369 = vpow2.f32 %v1862_v36  ;;  %v1975_v23 = vmul.f32 1.442695, %v634_v31  ;;  %v1977_v61 = vmul.f32 1.442695, %v639_v22  ;;  %v427_v63 = vmul.f32 %v1738_v51, %v1864_v37 }
  0xe5   :  { %v1981_v24 = vpop.eup %1351  ;;  %1371 = vpow2.f32 %v1868_v39  ;;  %v1984_v42 = vmul.f32 1.442695, %v640_v11  ;;  %v1986_v2 = vmul.f32 1.442695, %v569_v18  ;;  %v1988_v56 = vmul.f32 1.442695, %v570_v57  ;;  %v1990_v9 = vpop.permute.xlu1 %180 }
  0xe6   :  { %v1354_v36 = vpop.eup %1353  ;;  %1373 = vpow2.f32 %v1880_v46  ;;  %v428_v17 = vmul.f32 %v1741_v52, %v1864_v37  ;;  %v575_v40 = vsub.f32 %v427_v63, %v1788_v25  ;;  %v489_v41 = vmul.f32 %v1732_v47, %v1878_v45 }
  0xe7   :  { %v1356_v39 = vpop.eup %1355  ;;  %1375 = vpow2.f32 %v1882_v27  ;;  %v490_v43 = vmul.f32 %v1735_v49, %v1878_v45  ;;  %v495_v44 = vmul.f32 %v1732_v47, %v1892_v30  ;;  %v496_v46 = vmul.f32 %v1735_v49, %v1892_v30  ;;  %v2005_v21 = vpop.permute.xlu0 %310 }
  0xe8   :  { %v1358_v37 = vpop.eup %1357  ;;  %1377 = vpow2.f32 %v1886_v48  ;;  %v576_v31 = vsub.f32 %v428_v17, %v1791_v26  ;;  %v2009_v22 = vmul.f32 1.442695, %v575_v40  ;;  %v637_v27 = vsub.f32 %v489_v41, %v1811_v33 }
  0xe9   :  { %v2012_v11 = vpop.eup %1359  ;;  %1379 = vpow2.f32 %v1888_v29  ;;  %v638_v45 = vsub.f32 %v490_v43, %v1814_v34  ;;  %v643_v18 = vsub.f32 %v495_v44, %v1811_v33  ;;  %v644_v30 = vsub.f32 %v496_v46, %v1814_v34  ;;  %v2018_v57 = vpop.permute.xlu1 %325 }
  0xea   :  { %v1362_v63 = vpop.eup %1361  ;;  %1381 = vpow2.f32 %v1890_v50  ;;  %v2021_v48 = vmul.f32 1.442695, %v576_v31  ;;  %v2023_v17 = vmul.f32 1.442695, %v637_v27  ;;  %v425_v40 = vmul.f32 %v1738_v51, %v1907_v60 }
  0xeb   :  { %v2027_v41 = vpop.eup %1363  ;;  %1383 = vpow2.f32 %v1912_v62  ;;  %v2030_v29 = vmul.f32 1.442695, %v638_v45  ;;  %v2032_v43 = vmul.f32 1.442695, %v643_v18  ;;  %v2034_v44 = vmul.f32 1.442695, %v644_v30  ;;  %v2036_v46 = vpop.permute.xlu0 %176 }
  0xec   :  { %v1366_v50 = vpop.eup %1365  ;;  %1385 = vpow2.f32 %v1924_v6  ;;  %v426_v31 = vmul.f32 %v1741_v52, %v1907_v60  ;;  %v573_v27 = vsub.f32 %v425_v40, %v1788_v25  ;;  %v431_v7 = vmul.f32 %v1738_v51, %v1920_v4 }
  0xed   :  { %v2044_v62 = vpop.eup %1367  ;;  %1387 = vpow2.f32 %v1926_v8  ;;  %v432_v45 = vmul.f32 %v1741_v52, %v1920_v4  ;;  %v1201_v18 = vpack.c.bf16 %v1957_v0, %v1940_v38  ;;  %v1261_v30 = vpack.c.bf16 %v1358_v37, %v1354_v36  ;;  %v2051_v6 = vpop.permute.xlu1 %191 }
  0xee   :  { %v1370_v20 = vpop.eup %1369  ;;  %1389 = vpow2.f32 %v1932_v13  ;;  %v574_v60 = vsub.f32 %v426_v31, %v1791_v26  ;;  %v2055_v40 = vmul.f32 1.442695, %v573_v27  ;;  %v579_v3 = vsub.f32 %v431_v7, %v1788_v25 }
  0xef   :  { %v1372_v10 = vpop.eup %1371  ;;  %1391 = vpow2.f32 %v1934_v14  ;;  %v580_v4 = vsub.f32 %v432_v45, %v1791_v26  ;;  %1262 = vmatprep.subr.bf16.mxu1 %v1261_v30  ;;  %v1263_v8 = vpack.c.bf16 %v1356_v39, %v1981_v24  ;;  %v1265_v38 = vpack.c.bf16 %v1366_v50, %v1362_v63  ;;  %v2061_v0 = vpop.permute.xlu0 %318 }
  0xf0   :  { %v1374_v36 = vpop.eup %1373  ;;  %1393 = vpow2.f32 %v1936_v15  ;;  %v2064_v13 = vmul.f32 1.442695, %v574_v60  ;;  %v1199_v37 = vpack.c.bf16 %v1899_v55, %v1372_v10  ;;  %v2067_v31 = vmul.f32 1.442695, %v579_v3 }
  0xf1   :  { %v2069_v7 = vpop.eup %1375  ;;  %1395 = vpow2.f32 %v1961_v53  ;;  %v1197_v14 = vpack.c.bf16 %v1909_v32, %v1374_v36  ;;  %v2073_v27 = vmul.f32 1.442695, %v580_v4  ;;  %1264 = vmatpush1.bf16.msra.mxu1 %v1263_v8  ;;  %v493_v24 = vmul.f32 %v1732_v47, %v1938_v16  ;;  %v2086_v32 = vpop.permute.xlu1 %333 }
  0xf2   :  { %v2077_v39 = vpop.eup %1377  ;;  %1397 = vpow2.f32 %v1975_v23  ;;  %1266 = vmatprep.subr.bf16.mxu1 %v1265_v38  ;;  %v494_v3 = vmul.f32 %v1735_v49, %v1938_v16  ;;  %v1203_v10 = vpack.c.bf16 %v1947_v19, %v1930_v12  ;;  %v499_v55 = vmul.f32 %v1732_v47, %v1955_v28 }
  0xf3   :  { %v1380_v15 = vpop.eup %1379  ;;  %1399 = vpow2.f32 %v1977_v61  ;;  %1198 = vmatprep.subr.bf16.mxu0 %v1197_v14  ;;  %v641_v53 = vsub.f32 %v493_v24, %v1811_v33  ;;  %v500_v23 = vmul.f32 %v1735_v49, %v1955_v28  ;;  %v1267_v16 = vpack.c.bf16 %v2027_v41, %v2012_v11  ;;  %v2094_v63 = vpop.permute.xlu0 %184 }
  0xf4   :  { %v1382_v12 = vpop.eup %1381  ;;  %1401 = vpow2.f32 %v1984_v42  ;;  %1200 = vmatpush1.bf16.msra.mxu0 %v1199_v37  ;;  %v642_v19 = vsub.f32 %v494_v3, %v1814_v34  ;;  %v647_v50 = vsub.f32 %v499_v55, %v1811_v33  ;;  %v429_v61 = vmul.f32 %v1738_v51, %v1970_v58 }
  0xf5   :  { %v2101_v45 = vpop.eup %1383  ;;  %1403 = vpow2.f32 %v1986_v2  ;;  %1202 = vmatprep.subr.bf16.mxu0 %v1201_v18  ;;  %v2104_v28 = vmul.f32 1.442695, %v641_v53  ;;  %v648_v11 = vsub.f32 %v500_v23, %v1814_v34  ;;  %1268 = vmatpush1.bf16.msra.mxu1 %v1267_v16  ;;  %v1269_v41 = vpack.c.bf16 %v1382_v12, %v1370_v20  ;;  %v2129_v37 = vpop.permute.xlu1 %199 }
  0xf6   :  { %v2107_v42 = vpop.eup %1385  ;;  %1405 = vpow2.f32 %v1988_v56  ;;  %v2110_v30 = vmul.f32 1.442695, %v642_v19  ;;  %v2112_v60 = vmul.f32 1.442695, %v647_v50  ;;  %v430_v4 = vmul.f32 %v1741_v52, %v1970_v58 }
  0xf7   :  { %v1388_v8 = vpop.eup %1387  ;;  %1407 = vpow2.f32 %v2009_v22  ;;  %v2117_v2 = vmul.f32 1.442695, %v648_v11  ;;  %1270 = vmatprep.subr.bf16.mxu1 %v1269_v41  ;;  %v577_v18 = vsub.f32 %v429_v61, %v1788_v25  ;;  %v435_v20 = vmul.f32 %v1738_v51, %v1990_v9  ;;  %v2122_v38 = vpop.permute.xlu0 %329 }
  0xf8   :  { %v1390_v56 = vpop.eup %1389  ;;  %1409 = vpow2.f32 %v2021_v48  ;;  %1204 = vmatpush1.bf16.msra.mxu0 %v1203_v10  ;;  %v578_v36 = vsub.f32 %v430_v4, %v1791_v26  ;;  %v1207_v58 = vpack.c.bf16 %v1388_v8, %v1964_v54  ;;  %v436_v22 = vmul.f32 %v1741_v52, %v1990_v9 }
  0xf9   :  { %v2131_v14 = vpop.eup %1391  ;;  %1411 = vpow2.f32 %v2023_v17  ;;  %v1205_v24 = vpack.c.bf16 %v1390_v56, %v1972_v59  ;;  %v2135_v3 = vmul.f32 1.442695, %v577_v18  ;;  %v583_v48 = vsub.f32 %v435_v20, %v1788_v25  ;;  %v2173_v41 = vpop.permute.xlu1 %341 }
  0xfa   :  { %v2138_v10 = vpop.eup %1393  ;;  %1413 = vpow2.f32 %v2030_v29  ;;  %v2141_v54 = vmul.f32 1.442695, %v578_v36  ;;  %v584_v9 = vsub.f32 %v436_v22, %v1791_v26  ;;  %v1271_v55 = vpack.c.bf16 %v1380_v15, %v2044_v62 }
  0xfb   :  { %v1396_v53 = vpop.eup %1395  ;;  %1415 = vpow2.f32 %v2032_v43  ;;  %1206 = vmatprep.subr.bf16.mxu0 %v1205_v24  ;;  %v2146_v17 = vmul.f32 1.442695, %v583_v48  ;;  %v497_v59 = vmul.f32 %v1732_v47, %v2005_v21  ;;  %v498_v23 = vmul.f32 %v1735_v49, %v2005_v21  ;;  %v2152_v16 = vpop.permute.xlu0 %195 }
  0xfc   :  { %v1398_v29 = vpop.eup %1397  ;;  %1417 = vpow2.f32 %v2034_v44  ;;  %1208 = vmatpush1.bf16.msra.mxu0 %v1207_v58  ;;  %v2155_v12 = vmul.f32 1.442695, %v584_v9  ;;  %1272 = vmatpush1.bf16.msra.mxu1 %v1271_v55  ;;  %v503_v43 = vmul.f32 %v1732_v47, %v2018_v57  ;;  %v504_v62 = vmul.f32 %v1735_v49, %v2018_v57 }
  0xfd   :  { %v2161_v15 = vpop.eup %1399  ;;  %1419 = vpow2.f32 %v2055_v40  ;;  %v1273_v21 = vpack.c.bf16 %v1398_v29, %v1922_v5  ;;  %v645_v19 = vsub.f32 %v497_v59, %v1811_v33  ;;  %v646_v44 = vsub.f32 %v498_v23, %v1814_v34 }
  0xfe   :  { %v2167_v50 = vpop.eup %1401  ;;  %1421 = vpow2.f32 %v2064_v13  ;;  %v651_v61 = vsub.f32 %v503_v43, %v1811_v33  ;;  %v652_v11 = vsub.f32 %v504_v62, %v1814_v34  ;;  %v1275_v57 = vpack.c.bf16 %v1396_v53, %v1915_v1 }
  0xff   :  { %v1404_v4 = vpop.eup %1403  ;;  %1423 = vpow2.f32 %v2067_v31  ;;  %1274 = vmatprep.subr.bf16.mxu1 %v1273_v21  ;;  %v863_v5 = vmul.f32 1.442695, %v645_v19  ;;  %v865_v40 = vmul.f32 1.442695, %v646_v44  ;;  %v433_v8 = vmul.f32 %v1738_v51, %v2036_v46  ;;  %v2178_v18 = vpop.permute.xlu0 %337 }
 0x100   :  { %v1406_v13 = vpop.eup %1405  ;;  %1425 = vpow2.f32 %v2073_v27  ;;  %v1211_v20 = vpack.c.bf16 %v1404_v4, %v2069_v7  ;;  %v875_v56 = vmul.f32 1.442695, %v651_v61  ;;  %v2182_v1 = vmul.f32 1.442695, %v652_v11  ;;  %1276 = vmatpush1.bf16.msra.mxu1 %v1275_v57 }
 0x101   :  { %v2184_v36 = vpop.eup %1407  ;;  %1427 = vpow2.f32 %v2104_v28  ;;  %v1209_v31 = vpack.c.bf16 %v1406_v13, %v2077_v39  ;;  %v434_v58 = vmul.f32 %v1741_v52, %v2036_v46  ;;  %v581_v22 = vsub.f32 %v433_v8, %v1788_v25 }
 0x102   :  { %v2191_v24 = vpop.eup %1409  ;;  %1429 = vpow2.f32 %v2110_v30  ;;  %v439_v7 = vmul.f32 %v1738_v51, %v2051_v6  ;;  %v440_v27 = vmul.f32 %v1741_v52, %v2051_v6  ;;  %v501_v28 = vmul.f32 %v1732_v47, %v2061_v0 }
 0x103   :  { %v1412_v48 = vpop.eup %1411  ;;  %1431 = vpow2.f32 %v2112_v60  ;;  %1210 = vmatprep.subr.bf16.mxu0 %v1209_v31  ;;  %v582_v46 = vsub.f32 %v434_v58, %v1791_v26  ;;  %v735_v39 = vmul.f32 1.442695, %v581_v22  ;;  %v502_v9 = vmul.f32 %v1735_v49, %v2061_v0  ;;  %v2204_v30 = vpop.permute.xlu0 %203 }
 0x104   :  { %v1414_v55 = vpop.eup %1413  ;;  %1433 = vpow2.f32 %v2117_v2  ;;  %1212 = vmatpush1.bf16.msra.mxu0 %v1211_v20  ;;  %v587_v6 = vsub.f32 %v439_v7, %v1788_v25  ;;  %v588_v53 = vsub.f32 %v440_v27, %v1791_v26  ;;  %v1279_v59 = vpack.c.bf16 %v1412_v48, %v2101_v45  ;;  %v2210_v60 = vpop.permute.xlu1 %207 }
 0x105   :  { %v2212_v23 = vpop.eup %1415  ;;  %1435 = vpow2.f32 %v2135_v3  ;;  %v1277_v0 = vpack.c.bf16 %v1414_v55, %v2107_v42  ;;  %v737_v29 = vmul.f32 1.442695, %v582_v46  ;;  %v649_v43 = vsub.f32 %v501_v28, %v1811_v33 }
 0x106   :  { %v2217_v62 = vpop.eup %1417  ;;  %1437 = vpow2.f32 %v2141_v54  ;;  %v747_v2 = vmul.f32 1.442695, %v587_v6  ;;  %v749_v21 = vmul.f32 1.442695, %v588_v53  ;;  %v650_v19 = vsub.f32 %v502_v9, %v1814_v34 }
 0x107   :  { %v1420_v45 = vpop.eup %1419  ;;  %1439 = vpow2.f32 %v2146_v17  ;;  %1278 = vmatprep.subr.bf16.mxu1 %v1277_v0  ;;  %v871_v44 = vmul.f32 1.442695, %v649_v43  ;;  %v507_v3 = vmul.f32 %v1732_v47, %v2086_v32  ;;  %v508_v42 = vmul.f32 %v1735_v49, %v2086_v32  ;;  %v2226_v61 = vpop.permute.xlu0 %345 }
 0x108   :  { %v1422_v11 = vpop.eup %1421  ;;  %1441 = vpow2.f32 %v2155_v12  ;;  %1280 = vmatpush1.bf16.msra.mxu1 %v1279_v59  ;;  %v873_v54 = vmul.f32 1.442695, %v650_v19  ;;  %v1215_v57 = vpack.c.bf16 %v1420_v45, %v2131_v14  ;;  %v437_v17 = vmul.f32 %v1738_v51, %v2094_v63  ;;  %v2244_v58 = vpop.permute.xlu1 %349 }
 0x109   :  { %v2232_v4 = vpop.eup %1423  ;;  %1443 = vpow2.f32 %v863_v5  ;;  %v1213_v8 = vpack.c.bf16 %v1422_v11, %v2138_v10  ;;  %v655_v13 = vsub.f32 %v507_v3, %v1811_v33  ;;  %v656_v32 = vsub.f32 %v508_v42, %v1814_v34 }
 0x10a   :  { %v2237_v20 = vpop.eup %1425  ;;  %1445 = vpow2.f32 %v865_v40  ;;  %v438_v12 = vmul.f32 %v1741_v52, %v2094_v63  ;;  %v585_v14 = vsub.f32 %v437_v17, %v1788_v25  ;;  %v443_v31 = vmul.f32 %v1738_v51, %v2129_v37 }
 0x10b   :  { %v1428_v5 = vpop.eup %1427  ;;  %1447 = vpow2.f32 %v875_v56  ;;  %1214 = vmatprep.subr.bf16.mxu0 %v1213_v8  ;;  %v883_v10 = vmul.f32 1.442695, %v655_v13  ;;  %v885_v22 = vmul.f32 1.442695, %v656_v32  ;;  %v444_v7 = vmul.f32 %v1741_v52, %v2129_v37  ;;  %v2256_v55 = vpop.permute.xlu0 %211 }
 0x10c   :  { %v1430_v27 = vpop.eup %1429  ;;  %1449 = vpow2.f32 %v2182_v1  ;;  %1216 = vmatpush1.bf16.msra.mxu0 %v1215_v57  ;;  %v586_v63 = vsub.f32 %v438_v12, %v1791_v26  ;;  %v743_v40 = vmul.f32 1.442695, %v585_v14  ;;  %v1283_v28 = vpack.c.bf16 %v1428_v5, %v2161_v15  ;;  %v2269_v45 = vpop.permute.xlu1 %215 }
 0x10d   :  { %v2251_v48 = vpop.eup %1431  ;;  %1451 = vpow2.f32 %v735_v39  ;;  %v1281_v56 = vpack.c.bf16 %v1430_v27, %v2167_v50  ;;  %v591_v46 = vsub.f32 %v443_v31, %v1788_v25  ;;  %v592_v9 = vsub.f32 %v444_v7, %v1791_v26 }
 0x10e   :  { %v2258_v37 = vpop.eup %1433  ;;  %1453 = vpow2.f32 %v737_v29  ;;  %v745_v1 = vmul.f32 1.442695, %v586_v63  ;;  %v505_v6 = vmul.f32 %v1732_v47, %v2122_v38  ;;  %v506_v15 = vmul.f32 %v1735_v49, %v2122_v38 }
 0x10f   :  { %v1436_v53 = vpop.eup %1435  ;;  %1455 = vpow2.f32 %v747_v2  ;;  %1282 = vmatprep.subr.bf16.mxu1 %v1281_v56  ;;  %v755_v50 = vmul.f32 1.442695, %v591_v46  ;;  %v757_v39 = vmul.f32 1.442695, %v592_v9  ;;  %v511_v59 = vmul.f32 %v1732_v47, %v2173_v41 }
 0x110   :  { %v1438_v0 = vpop.eup %1437  ;;  %1457 = vpow2.f32 %v749_v21  ;;  %1284 = vmatpush1.bf16.msra.mxu1 %v1283_v28  ;;  %v653_v29 = vsub.f32 %v505_v6, %v1811_v33  ;;  %v654_v43 = vsub.f32 %v506_v15, %v1814_v34  ;;  %v1219_v19 = vpack.c.bf16 %v1436_v53, %v2184_v36  ;;  %v2299_v27 = vpop.permute.xlu1 %357 }
 0x111   :  { %v2271_v38 = vpop.eup %1439  ;;  %1459 = vpow2.f32 %v871_v44  ;;  %v1217_v2 = vpack.c.bf16 %v1438_v0, %v2191_v24  ;;  %v512_v3 = vmul.f32 %v1735_v49, %v2173_v41  ;;  %v659_v42 = vsub.f32 %v511_v59, %v1811_v33  ;;  %v2284_v41 = vpop.permute.xlu0 %353 }
 0x112   :  { %v2277_v21 = vpop.eup %1441  ;;  %1461 = vpow2.f32 %v873_v54  ;;  %v879_v11 = vmul.f32 1.442695, %v653_v29  ;;  %v881_v57 = vmul.f32 1.442695, %v654_v43  ;;  %v441_v36 = vmul.f32 %v1738_v51, %v2152_v16 }
 0x113   :  { %v1444_v17 = vpop.eup %1443  ;;  %1463 = vpow2.f32 %v883_v10  ;;  %1218 = vmatprep.subr.bf16.mxu0 %v1217_v2  ;;  %v660_v44 = vsub.f32 %v512_v3, %v1814_v34  ;;  %v891_v8 = vmul.f32 1.442695, %v659_v42  ;;  %v442_v24 = vmul.f32 %v1741_v52, %v2152_v16 }
 0x114   :  { %v1446_v13 = vpop.eup %1445  ;;  %1465 = vpow2.f32 %v885_v22  ;;  %1220 = vmatpush1.bf16.msra.mxu0 %v1219_v19  ;;  %v589_v54 = vsub.f32 %v441_v36, %v1788_v25  ;;  %v1287_v32 = vpack.c.bf16 %v1444_v17, %v2212_v23  ;;  %v447_v12 = vmul.f32 %v1738_v51, %v2210_v60 }
 0x115   :  { %v2290_v14 = vpop.eup %1447  ;;  %1467 = vpow2.f32 %v743_v40  ;;  %v893_v31 = vmul.f32 1.442695, %v660_v44  ;;  %v1285_v5 = vpack.c.bf16 %v1446_v13, %v2217_v62  ;;  %v590_v16 = vsub.f32 %v442_v24, %v1791_v26 }
 0x116   :  { %v2294_v10 = vpop.eup %1449  ;;  %1469 = vpow2.f32 %v745_v1  ;;  %v751_v22 = vmul.f32 1.442695, %v589_v54  ;;  %v448_v7 = vmul.f32 %v1741_v52, %v2210_v60  ;;  %v595_v23 = vsub.f32 %v447_v12, %v1788_v25 }
 0x117   :  { %v1452_v63 = vpop.eup %1451  ;;  %1471 = vpow2.f32 %v755_v50  ;;  %1286 = vmatprep.subr.bf16.mxu1 %v1285_v5  ;;  %v753_v40 = vmul.f32 1.442695, %v590_v16  ;;  %v509_v62 = vmul.f32 %v1732_v47, %v2178_v18  ;;  %v510_v28 = vmul.f32 %v1735_v49, %v2178_v18  ;;  %v2312_v50 = vpop.permute.xlu0 %219 }
 0x118   :  { %v1454_v56 = vpop.eup %1453  ;;  %1473 = vpow2.f32 %v757_v39  ;;  %1288 = vmatpush1.bf16.msra.mxu1 %v1287_v32  ;;  %v596_v46 = vsub.f32 %v448_v7, %v1791_v26  ;;  %v763_v60 = vmul.f32 1.442695, %v595_v23  ;;  %v1223_v9 = vpack.c.bf16 %v1452_v63, %v2232_v4 }
 0x119   :  { %v2307_v1 = vpop.eup %1455  ;;  %1475 = vpow2.f32 %v879_v11  ;;  %v1221_v6 = vpack.c.bf16 %v1454_v56, %v2237_v20  ;;  %v657_v15 = vsub.f32 %v509_v62, %v1811_v33  ;;  %v658_v53 = vsub.f32 %v510_v28, %v1814_v34  ;;  %v2326_v11 = vpop.permute.xlu1 %223 }
 0x11a   :  { %v2314_v18 = vpop.eup %1457  ;;  %1477 = vpow2.f32 %v881_v57  ;;  %v765_v39 = vmul.f32 1.442695, %v596_v46  ;;  %v515_v59 = vmul.f32 %v1732_v47, %v2244_v58  ;;  %v516_v4 = vmul.f32 %v1735_v49, %v2244_v58 }
 0x11b   :  { %v1460_v0 = vpop.eup %1459  ;;  %1479 = vpow2.f32 %v891_v8  ;;  %1222 = vmatprep.subr.bf16.mxu0 %v1221_v6  ;;  %v887_v20 = vmul.f32 1.442695, %v657_v15  ;;  %v889_v29 = vmul.f32 1.442695, %v658_v53  ;;  %v445_v43 = vmul.f32 %v1738_v51, %v2204_v30  ;;  %v2340_v12 = vpop.permute.xlu0 %361 }
 0x11c   :  { %v1462_v19 = vpop.eup %1461  ;;  %1481 = vpow2.f32 %v893_v31  ;;  %1224 = vmatpush1.bf16.msra.mxu0 %v1223_v9  ;;  %v663_v2 = vsub.f32 %v515_v59, %v1811_v33  ;;  %v664_v3 = vsub.f32 %v516_v4, %v1814_v34  ;;  %v446_v42 = vmul.f32 %v1741_v52, %v2204_v30 }
 0x11d   :  { %v2328_v58 = vpop.eup %1463  ;;  %1483 = vpow2.f32 %v751_v22  ;;  %v1289_v57 = vpack.c.bf16 %v1462_v19, %v2258_v37  ;;  %v593_v36 = vsub.f32 %v445_v43, %v1788_v25  ;;  %v1291_v17 = vpack.c.bf16 %v1460_v0, %v2251_v48  ;;  %v2356_v56 = vpop.permute.xlu1 %365 }
 0x11e   :  { %v2333_v44 = vpop.eup %1465  ;;  %1485 = vpow2.f32 %v753_v40  ;;  %v899_v8 = vmul.f32 1.442695, %v663_v2  ;;  %v901_v24 = vmul.f32 1.442695, %v664_v3  ;;  %v594_v13 = vsub.f32 %v446_v42, %v1791_v26 }
 0x11f   :  { %v1468_v54 = vpop.eup %1467  ;;  %1487 = vpow2.f32 %v763_v60  ;;  %1290 = vmatprep.subr.bf16.mxu1 %v1289_v57  ;;  %v759_v30 = vmul.f32 1.442695, %v593_v36  ;;  %v451_v32 = vmul.f32 %v1738_v51, %v2269_v45  ;;  %v452_v37 = vmul.f32 %v1741_v52, %v2269_v45  ;;  %v2368_v0 = vpop.permute.xlu0 %227 }
 0x120   :  { %v1470_v48 = vpop.eup %1469  ;;  %1489 = vpow2.f32 %v765_v39  ;;  %v761_v31 = vmul.f32 1.442695, %v594_v13  ;;  %1292 = vmatpush1.bf16.msra.mxu1 %v1291_v17  ;;  %v513_v5 = vmul.f32 %v1732_v47, %v2226_v61  ;;  %v514_v16 = vmul.f32 %v1735_v49, %v2226_v61 }
 0x121   :  { %v2346_v22 = vpop.eup %1471  ;;  %1491 = vpow2.f32 %v887_v20  ;;  %v599_v7 = vsub.f32 %v451_v32, %v1788_v25  ;;  %v600_v23 = vsub.f32 %v452_v37, %v1791_v26  ;;  %v1225_v45 = vpack.c.bf16 %v1470_v48, %v2277_v21  ;;  %v232_v17 = vpop.permute.xlu1 %231 }
 0x122   :  { %v2351_v63 = vpop.eup %1473  ;;  %1493 = vpow2.f32 %v889_v29  ;;  %v661_v40 = vsub.f32 %v513_v5, %v1811_v33  ;;  %v662_v62 = vsub.f32 %v514_v16, %v1814_v34  ;;  %v1227_v28 = vpack.c.bf16 %v1468_v54, %v2271_v38 }
 0x123   :  { %v1476_v61 = vpop.eup %1475  ;;  %1495 = vpow2.f32 %v899_v8  ;;  %v771_v46 = vmul.f32 1.442695, %v599_v7  ;;  %v773_v60 = vmul.f32 1.442695, %v600_v23  ;;  %1226 = vmatprep.subr.bf16.mxu0 %v1225_v45  ;;  %v519_v9 = vmul.f32 %v1732_v47, %v2299_v27  ;;  %v2394_v16 = vpop.permute.xlu0 %369 }
 0x124   :  { %v1478_v21 = vpop.eup %1477  ;;  %1497 = vpow2.f32 %v901_v24  ;;  %v895_v6 = vmul.f32 1.442695, %v661_v40  ;;  %v897_v15 = vmul.f32 1.442695, %v662_v62  ;;  %1228 = vmatpush1.bf16.msra.mxu0 %v1227_v28  ;;  %v520_v53 = vmul.f32 %v1735_v49, %v2299_v27 }
 0x125   :  { %v2362_v39 = vpop.eup %1479  ;;  %1499 = vpow2.f32 %v759_v30  ;;  %v667_v38 = vsub.f32 %v519_v9, %v1811_v33  ;;  %v1293_v59 = vpack.c.bf16 %v1478_v21, %v2294_v10  ;;  %v449_v4 = vmul.f32 %v1738_v51, %v2256_v55  ;;  %v374_v9 = vpop.permute.xlu1 %373 }
 0x126   :  { %v2370_v20 = vpop.eup %1481  ;;  %1501 = vpow2.f32 %v761_v31  ;;  %v668_v29 = vsub.f32 %v520_v53, %v1814_v34  ;;  %v450_v27 = vmul.f32 %v1741_v52, %v2256_v55  ;;  %v1295_v43 = vpack.c.bf16 %v1476_v61, %v2290_v14 }
 0x127   :  { %v1484_v19 = vpop.eup %1483  ;;  %1503 = vpow2.f32 %v771_v46  ;;  %v907_v2 = vmul.f32 1.442695, %v667_v38  ;;  %1294 = vmatprep.subr.bf16.mxu1 %v1293_v59  ;;  %v597_v10 = vsub.f32 %v449_v4, %v1788_v25  ;;  %v455_v3 = vmul.f32 %v1738_v51, %v2326_v11 }
 0x128   :  { %v1486_v42 = vpop.eup %1485  ;;  %1505 = vpow2.f32 %v773_v60  ;;  %v909_v57 = vmul.f32 1.442695, %v668_v29  ;;  %v598_v36 = vsub.f32 %v450_v27, %v1791_v26  ;;  %1296 = vmatpush1.bf16.msra.mxu1 %v1295_v43  ;;  %v456_v55 = vmul.f32 %v1741_v52, %v2326_v11 }
 0x129   :  { %v2382_v14 = vpop.eup %1487  ;;  %1507 = vpow2.f32 %v895_v6  ;;  %v767_v8 = vmul.f32 1.442695, %v597_v10  ;;  %v603_v24 = vsub.f32 %v455_v3, %v1788_v25  ;;  %v1229_v13 = vpack.c.bf16 %v1486_v42, %v2314_v18 }
 0x12a   :  { %v2386_v54 = vpop.eup %1489  ;;  %1509 = vpow2.f32 %v897_v15  ;;  %v769_v30 = vmul.f32 1.442695, %v598_v36  ;;  %v604_v32 = vsub.f32 %v456_v55, %v1791_v26  ;;  %v517_v37 = vmul.f32 %v1732_v47, %v2284_v41 }
 0x12b   :  { %v1492_v48 = vpop.eup %1491  ;;  %1511 = vpow2.f32 %v907_v2  ;;  %v779_v11 = vmul.f32 1.442695, %v603_v24  ;;  %1230 = vmatprep.subr.bf16.mxu0 %v1229_v13  ;;  %v518_v31 = vmul.f32 %v1735_v49, %v2284_v41  ;;  %v1231_v5 = vpack.c.bf16 %v1484_v19, %v2307_v1  ;;  %v2419_v19 = vpop.permute.xlu0 %235 }
 0x12c   :  { %v1494_v18 = vpop.eup %1493  ;;  %1513 = vpow2.f32 %v909_v57  ;;  %v781_v7 = vmul.f32 1.442695, %v604_v32  ;;  %v665_v23 = vsub.f32 %v517_v37, %v1811_v33  ;;  %v523_v45 = vmul.f32 %v1732_v47, %v2356_v56  ;;  %v240_v13 = vpop.permute.xlu1 %239 }
 0x12d   :  { %v2399_v40 = vpop.eup %1495  ;;  %1515 = vpow2.f32 %v767_v8  ;;  %v666_v62 = vsub.f32 %v518_v31, %v1814_v34  ;;  %1232 = vmatpush1.bf16.msra.mxu0 %v1231_v5  ;;  %v524_v41 = vmul.f32 %v1735_v49, %v2356_v56  ;;  %v1297_v1 = vpack.c.bf16 %v1494_v18, %v2333_v44 }
 0x12e   :  { %v2405_v28 = vpop.eup %1497  ;;  %1517 = vpow2.f32 %v769_v30  ;;  %v903_v61 = vmul.f32 1.442695, %v665_v23  ;;  %v671_v46 = vsub.f32 %v523_v45, %v1811_v33  ;;  %v453_v60 = vmul.f32 %v1738_v51, %v2312_v50 }
 0x12f   :  { %v1500_v21 = vpop.eup %1499  ;;  %1519 = vpow2.f32 %v779_v11  ;;  %v905_v6 = vmul.f32 1.442695, %v666_v62  ;;  %v672_v15 = vsub.f32 %v524_v41, %v1814_v34  ;;  %1298 = vmatprep.subr.bf16.mxu1 %v1297_v1  ;;  %v454_v56 = vmul.f32 %v1741_v52, %v2312_v50  ;;  %v2442_v23 = vpop.permute.xlu0 %377 }
 0x130   :  { %v1502_v44 = vpop.eup %1501  ;;  %1521 = vpow2.f32 %v781_v7  ;;  %v915_v53 = vmul.f32 1.442695, %v671_v46  ;;  %v601_v38 = vsub.f32 %v453_v60, %v1788_v25  ;;  %v1299_v59 = vpack.c.bf16 %v1492_v48, %v2328_v58 }
 0x131   :  { %v2415_v4 = vpop.eup %1503  ;;  %1523 = vpow2.f32 %v903_v61  ;;  %v917_v29 = vmul.f32 1.442695, %v672_v15  ;;  %v602_v27 = vsub.f32 %v454_v56, %v1791_v26  ;;  %v459_v43 = vmul.f32 %v1738_v51, %v232_v17  ;;  %v382_v56 = vpop.permute.xlu1 %381 }
 0x132   :  { %v2421_v2 = vpop.eup %1505  ;;  %1525 = vpow2.f32 %v905_v6  ;;  %v775_v50 = vmul.f32 1.442695, %v601_v38  ;;  %1300 = vmatpush1.bf16.msra.mxu1 %v1299_v59  ;;  %v460_v10 = vmul.f32 %v1741_v52, %v232_v17  ;;  %v1233_v3 = vpack.c.bf16 %v1502_v44, %v2351_v63 }
 0x133   :  { %v1508_v58 = vpop.eup %1507  ;;  %1527 = vpow2.f32 %v915_v53  ;;  %v777_v42 = vmul.f32 1.442695, %v602_v27  ;;  %v607_v57 = vsub.f32 %v459_v43, %v1788_v25  ;;  %v521_v36 = vmul.f32 %v1732_v47, %v2340_v12 }
 0x134   :  { %v1510_v55 = vpop.eup %1509  ;;  %1529 = vpow2.f32 %v917_v29  ;;  %v608_v8 = vsub.f32 %v460_v10, %v1791_v26  ;;  %1234 = vmatprep.subr.bf16.mxu0 %v1233_v3  ;;  %v522_v24 = vmul.f32 %v1735_v49, %v2340_v12  ;;  %v1235_v17 = vpack.c.bf16 %v1500_v21, %v2346_v22 }
 0x135   :  { %v2432_v63 = vpop.eup %1511  ;;  %1531 = vpow2.f32 %v775_v50  ;;  %v787_v30 = vmul.f32 1.442695, %v607_v57  ;;  %v669_v32 = vsub.f32 %v521_v36, %v1811_v33  ;;  %v527_v37 = vmul.f32 %v1732_v47, %v374_v9 }
 0x136   :  { %v2436_v48 = vpop.eup %1513  ;;  %1533 = vpow2.f32 %v777_v42  ;;  %v789_v11 = vmul.f32 1.442695, %v608_v8  ;;  %v670_v31 = vsub.f32 %v522_v24, %v1814_v34  ;;  %1236 = vmatpush1.bf16.msra.mxu0 %v1235_v17  ;;  %v528_v12 = vmul.f32 %v1735_v49, %v374_v9 }
 0x137   :  { %v1516_v5 = vpop.eup %1515  ;;  %1535 = vpow2.f32 %v787_v30  ;;  %v911_v22 = vmul.f32 1.442695, %v669_v32  ;;  %v675_v18 = vsub.f32 %v527_v37, %v1811_v33  ;;  %v1301_v7 = vpack.c.bf16 %v1510_v55, %v2370_v20  ;;  %v248_v37 = vpop.permute.xlu1 %247 }
 0x138   :  { %v1518_v45 = vpop.eup %1517  ;;  %1537 = vpow2.f32 %v789_v11  ;;  %v913_v62 = vmul.f32 1.442695, %v670_v31  ;;  %v676_v41 = vsub.f32 %v528_v12, %v1814_v34  ;;  %v457_v1 = vmul.f32 %v1738_v51, %v2368_v0 }
 0x139   :  { %v2447_v61 = vpop.eup %1519  ;;  %1539 = vpow2.f32 %v911_v22  ;;  %v923_v46 = vmul.f32 1.442695, %v675_v18  ;;  %1302 = vmatprep.subr.bf16.mxu1 %v1301_v7  ;;  %v458_v60 = vmul.f32 %v1741_v52, %v2368_v0  ;;  %v1303_v20 = vpack.c.bf16 %v1508_v58, %v2362_v39 }
 0x13a   :  { %v2452_v9 = vpop.eup %1521  ;;  %1541 = vpow2.f32 %v913_v62  ;;  %v925_v21 = vmul.f32 1.442695, %v676_v41  ;;  %v605_v6 = vsub.f32 %v457_v1, %v1788_v25  ;;  %v463_v15 = vmul.f32 %v1738_v51, %v240_v13 }
 0x13b   :  { %v1524_v44 = vpop.eup %1523  ;;  %1543 = vpow2.f32 %v923_v46  ;;  %v606_v53 = vsub.f32 %v458_v60, %v1791_v26  ;;  %1304 = vmatpush1.bf16.msra.mxu1 %v1303_v20  ;;  %v464_v38 = vmul.f32 %v1741_v52, %v240_v13  ;;  %v1237_v0 = vpack.c.bf16 %v1518_v45, %v2386_v54  ;;  %v2468_v54 = vpop.permute.xlu0 %243 }
 0x13c   :  { %v1526_v59 = vpop.eup %1525  ;;  %1545 = vpow2.f32 %v925_v21  ;;  %v783_v39 = vmul.f32 1.442695, %v605_v6  ;;  %v611_v29 = vsub.f32 %v463_v15, %v1788_v25  ;;  %v525_v27 = vmul.f32 %v1732_v47, %v2394_v16 }
 0x13d   :  { %v2462_v43 = vpop.eup %1527  ;;  %v785_v50 = vmul.f32 1.442695, %v606_v53  ;;  %v612_v10 = vsub.f32 %v464_v38, %v1791_v26  ;;  %1238 = vmatprep.subr.bf16.mxu0 %v1237_v0  ;;  %v526_v3 = vmul.f32 %v1735_v49, %v2394_v16  ;;  %v1239_v58 = vpack.c.bf16 %v1516_v5, %v2382_v14 }
 0x13e   :  { %v2470_v42 = vpop.eup %1529  ;;  %1547 = vpow2.f32 %v783_v39  ;;  %v795_v57 = vmul.f32 1.442695, %v611_v29  ;;  %v673_v36 = vsub.f32 %v525_v27, %v1811_v33  ;;  %v531_v55 = vmul.f32 %v1732_v47, %v382_v56 }
 0x13f   :  { %v1532_v8 = vpop.eup %1531  ;;  %1549 = vpow2.f32 %v785_v50  ;;  %v797_v24 = vmul.f32 1.442695, %v612_v10  ;;  %v674_v17 = vsub.f32 %v526_v3, %v1814_v34  ;;  %1240 = vmatpush1.bf16.msra.mxu0 %v1239_v58  ;;  %v532_v16 = vmul.f32 %v1735_v49, %v382_v56  ;;  %v386_v46 = vpop.permute.xlu0 %385 }
 0x140   :  { %v1534_v13 = vpop.eup %1533  ;;  %1551 = vpow2.f32 %v795_v57  ;;  %v919_v14 = vmul.f32 1.442695, %v673_v36  ;;  %v679_v30 = vsub.f32 %v531_v55, %v1811_v33  ;;  %v1305_v32 = vpack.c.bf16 %v1526_v59, %v2405_v28 }
 0x141   :  { %v2478_v11 = vpop.eup %1535  ;;  %1553 = vpow2.f32 %v797_v24  ;;  %v921_v31 = vmul.f32 1.442695, %v674_v17  ;;  %v680_v12 = vsub.f32 %v532_v16, %v1814_v34  ;;  %v461_v5 = vmul.f32 %v1738_v51, %v2419_v19 }
 0x142   :  { %v2483_v22 = vpop.eup %1537  ;;  %1555 = vpow2.f32 %v919_v14  ;;  %v931_v18 = vmul.f32 1.442695, %v679_v30  ;;  %1306 = vmatprep.subr.bf16.mxu1 %v1305_v32  ;;  %v462_v7 = vmul.f32 %v1741_v52, %v2419_v19  ;;  %v1307_v28 = vpack.c.bf16 %v1524_v44, %v2399_v40 }
 0x143   :  { %v1540_v45 = vpop.eup %1539  ;;  %1557 = vpow2.f32 %v921_v31  ;;  %v933_v62 = vmul.f32 1.442695, %v680_v12  ;;  %v609_v41 = vsub.f32 %v461_v5, %v1788_v25  ;;  %v467_v1 = vmul.f32 %v1738_v51, %v248_v37 }
 0x144   :  { %v1542_v60 = vpop.eup %1541  ;;  %1559 = vpow2.f32 %v931_v18  ;;  %v610_v20 = vsub.f32 %v462_v7, %v1791_v26  ;;  %1308 = vmatpush1.bf16.msra.mxu1 %v1307_v28  ;;  %v468_v21 = vmul.f32 %v1741_v52, %v248_v37  ;;  %v1241_v6 = vpack.c.bf16 %v1534_v13, %v2421_v2 }
 0x145   :  { %v2493_v19 = vpop.eup %1543  ;;  %1561 = vpow2.f32 %v933_v62  ;;  %v791_v40 = vmul.f32 1.442695, %v609_v41  ;;  %v615_v15 = vsub.f32 %v467_v1, %v1788_v25  ;;  %v529_v56 = vmul.f32 %v1732_v47, %v2442_v23  ;;  %v1595_v41 = vld [vmem:[#allocation6] sm:$0xf] }
 0x146   :  { %v2498_v44 = vpop.eup %1545  ;;  %v793_v53 = vmul.f32 1.442695, %v610_v20  ;;  %v616_v38 = vsub.f32 %v468_v21, %v1791_v26  ;;  %1242 = vmatprep.subr.bf16.mxu0 %v1241_v6  ;;  %v530_v0 = vmul.f32 %v1735_v49, %v2442_v23  ;;  %v1243_v2 = vpack.c.bf16 %v1532_v8, %v2415_v4  ;;  %v2586_v21 = vld [vmem:[#allocation13_spill] sm:$0xff] }
 0x147   :  { %1563 = vpow2.f32 %v791_v40  ;;  %v803_v59 = vmul.f32 1.442695, %v615_v15  ;;  %v677_v39 = vsub.f32 %v529_v56, %v1811_v33  ;;  %v1309_v29 = vpack.c.bf16 %v1542_v60, %v2436_v48  ;;  %v252_v48 = vpop.permute.xlu0 %251  ;;  %v2587_v56 = vld [vmem:[#allocation11_spill] sm:$0xff] }
 0x148   :  { %v1548_v27 = vpop.eup %1547  ;;  %1565 = vpow2.f32 %v793_v53  ;;  %v678_v50 = vsub.f32 %v530_v0, %v1814_v34  ;;  %1244 = vmatpush1.bf16.msra.mxu0 %v1243_v2  ;;  %v465_v10 = vmul.f32 %v1738_v51, %v2468_v54  ;;  %v805_v23 = vmul.f32 1.442695, %v616_v38 }
 0x149   :  { %v1550_v3 = vpop.eup %1549  ;;  %v927_v58 = vmul.f32 1.442695, %v677_v39  ;;  %1310 = vmatprep.subr.bf16.mxu1 %v1309_v29  ;;  %v466_v4 = vmul.f32 %v1741_v52, %v2468_v54  ;;  %v1311_v57 = vpack.c.bf16 %v1540_v45, %v2432_v63  ;;  %1567 = vpow2.f32 %v803_v59 }
 0x14a   :  { %v2514_v36 = vpop.eup %1551  ;;  %v929_v55 = vmul.f32 1.442695, %v678_v50  ;;  %v613_v8 = vsub.f32 %v465_v10, %v1788_v25  ;;  %v1245_v24 = vpack.c.bf16 %v1550_v3, %v2452_v9  ;;  %v533_v13 = vmul.f32 %v1732_v47, %v386_v46 }
 0x14b   :  { %v2518_v17 = vpop.eup %1553  ;;  %1569 = vpow2.f32 %v927_v58  ;;  %v614_v16 = vsub.f32 %v466_v4, %v1791_v26  ;;  %1312 = vmatpush1.bf16.msra.mxu1 %v1311_v57  ;;  %v534_v54 = vmul.f32 %v1735_v49, %v386_v46  ;;  %v1247_v30 = vpack.c.bf16 %v1548_v27, %v2447_v61  ;;  %v2588_v27 = vld [vmem:[#allocation14_spill] sm:$0xff] }
 0x14c   :  { %v1556_v63 = vpop.eup %1555  ;;  %1571 = vpow2.f32 %v929_v55  ;;  %v799_v14 = vmul.f32 1.442695, %v613_v8  ;;  %1246 = vmatprep.subr.bf16.mxu0 %v1245_v24  ;;  %v469_v32 = vmul.f32 %v1738_v51, %v252_v48  ;;  %v681_v31 = vsub.f32 %v533_v13, %v1811_v33 }
 0x14d   :  { %v1558_v37 = vpop.eup %1557  ;;  %v801_v9 = vmul.f32 1.442695, %v614_v16  ;;  %v682_v12 = vsub.f32 %v534_v54, %v1814_v34  ;;  %v470_v5 = vmul.f32 %v1741_v52, %v252_v48  ;;  %1248 = vmatpush1.bf16.msra.mxu0 %v1247_v30  ;;  %v1315_v61 = vpack.c.bf16 %v1556_v63, %v2462_v43 }
 0x14e   :  { %v2528_v47 = vpop.eup %1559  ;;  %1573 = vpow2.f32 %v799_v14  ;;  %v1313_v49 = vpack.c.bf16 %v1558_v37, %v2470_v42  ;;  %v617_v18 = vsub.f32 %v469_v32, %v1788_v25  ;;  %v935_v7 = vmul.f32 1.442695, %v681_v31 }
 0x14f   :  { %v1562_v51 = vpop.eup %1561  ;;  %1575 = vpow2.f32 %v801_v9  ;;  %v937_v28 = vmul.f32 1.442695, %v682_v12  ;;  %v618_v33 = vsub.f32 %v470_v5, %v1791_v26  ;;  %v939_v52 = vstv %s2509_s2 }
 0x150   :  { %1577 = vpow2.f32 %v805_v23  ;;  %1314 = vmatprep.subr.bf16.mxu1 %v1313_v49  ;;  %v807_v34 = vmul.f32 1.442695, %v617_v18  ;;  %v940_v42 = vmul.f32 %v1595_v41, %v939_v52  ;;  %vm943_vm1 = vcmp.eq.s32.totalorder %v2587_v56, 0 }
 0x151   :  { %v1564_v45 = vpop.eup %1563  ;;  %1579 = vpow2.f32 %v935_v7  ;;  %v809_v62 = vmul.f32 1.442695, %v618_v33  ;;  %1316 = vmatpush1.bf16.msra.mxu1 %v1315_v61  ;;  %v1139_v14 = vstv %s1196_s8 }
 0x152   :  { %v1566_v1 = vpop.eup %1565  ;;  %1581 = vpow2.f32 %v937_v28  ;;  %v1251_v25 = vpack.c.bf16 %v1564_v45, %v2478_v11  ;;  %v951_v46 = vrot.slane %v940_v42, %v1724_v35  ;;  %v2589_v28 = vld [vmem:[#allocation12_spill] sm:$0xff] }
 0x153   :  { %1583 = vpow2.f32 %v807_v34  ;;  %v1249_v43 = vpack.c.bf16 %v1566_v1, %v2483_v22  ;;  %v1568_v26 = vpop.eup %1567 }
 0x154   :  { %1585 = vpow2.f32 %v809_v62  ;;  %v952_v20 = vcombine.high %v951_v46, %v951_v46  ;;  %v960_v6 = vrot.slane %v951_v46, %v2586_v21  ;;  %v956_v4 = vrot.slane %v951_v46, %v2588_v27 }
 0x155   :  { %v1570_v60 = vpop.eup %1569  ;;  %1250 = vmatprep.subr.bf16.mxu0 %v1249_v43 }
 0x156   :  { %v1572_v40 = vpop.eup %1571  ;;  %1252 = vmatpush1.bf16.msra.mxu0 %v1251_v25  ;;  %v1319_v15 = vpack.c.bf16 %v1570_v60, %v2493_v19  ;;  %v968_v53 = vrot.slane %v952_v20, %v2586_v21  ;;  %v974_v35 = vsel %vm943_vm1, %v960_v6, 1.0  ;;  %v964_v50 = vrot.slane %v952_v20, %v2588_v27 }
 0x157   :  { %v1317_v11 = vpack.c.bf16 %v1572_v40, %v2498_v44  ;;  %1041 = vmatprep.mubr.f32.mxu0 %v974_v35 }
 0x158   :  { %v1574_v22 = vpop.eup %1573  ;;  %v976_v2 = vsel %vm943_vm1, %v968_v53, 1.0  ;;  %v975_v48 = vsel %vm943_vm1, %v964_v50, 1.0 }
 0x159   :  { %v1576_v38 = vpop.eup %1575  ;;  %1318 = vmatprep.subr.bf16.mxu1 %v1317_v11  ;;  %v1255_v0 = vpack.c.bf16 %v1574_v22, %v2514_v36  ;;  %1112 = vmatprep.mubr.f32.mxu1 %v976_v2  ;;  %v973_v36 = vsel %vm943_vm1, %v956_v4, 1.0 }
 0x15a   :  { %v1578_v59 = vpop.eup %1577  ;;  %1320 = vmatpush1.bf16.msra.mxu1 %v1319_v15  ;;  %v1253_v19 = vpack.c.bf16 %v1576_v38, %v2518_v17 }
 0x15b   :  { %v1580_v44 = vpop.eup %1579 }
 0x15c   :  { %v1582_v39 = vpop.eup %1581  ;;  %1254 = vmatprep.subr.bf16.mxu0 %v1253_v19  ;;  %v1323_v29 = vpack.c.bf16 %v1580_v44, %v2528_v47 }
 0x15d   :  { %v1584_v10 = vpop.eup %1583  ;;  %1256 = vmatpush1.bf16.msra.mxu0 %v1255_v0  ;;  %v1321_v3 = vpack.c.bf16 %v1582_v39, %v1562_v51 }
 0x15e   :  { %v1586_v23 = vpop.eup %1585  ;;  %v1259_v58 = vpack.c.bf16 %v1584_v10, %v1568_v26 }
 0x15f   :  { %1322 = vmatprep.subr.bf16.mxu1 %v1321_v3  ;;  %v1257_v57 = vpack.c.bf16 %v1586_v23, %v1578_v59 }
 0x160   :  { %1324 = vmatpush1.bf16.msra.mxu1 %v1323_v29 }
 0x161   :  { %1258 = vmatprep.subr.bf16.mxu0 %v1257_v57 }
 0x162   :  { %1260 = vmatpush1.bf16.msra.mxu0 %v1259_v58 }
 0x163   :  { %1113 = vmatmul.mubr.f32.vlgmr.msra.gmra.mrb[0].mxu1 %v975_v48 }
 0x165   :  { %1042 = vmatmul.mubr.f32.vlgmr.msra.gmra.mrb[0].mxu0 %v973_v36 }
 0x236   :  { %v1114_v55 = vpop.f32.mrb[0].mxu1 }
 0x237   :  { %1587 = vrcp.f32 %v1114_v55  ;;  %v1116_v8 = vpop.f32.mrb[1].mxu1 }
 0x238   :  { %1589 = vrcp.f32 %v1116_v8  ;;  %v1043_v24 = vpop.f32.mrb[0].mxu0 }
 0x239   :  { %1591 = vrcp.f32 %v1043_v24  ;;  %v1045_v17 = vpop.f32.mrb[1].mxu0 }
 0x23a   :  { %1593 = vrcp.f32 %v1045_v17 }
 0x241   :  { %v1588_v16 = vpop.eup %1587 }
 0x242   :  { %v1590_v13 = vpop.eup %1589  ;;  %v1129_v54 = vrot.slane %v1588_v16, 1 }
 0x243   :  { %v1592_v63 = vpop.eup %1591  ;;  %v1130_v30 = vrot.slane %v1590_v13, 1 }
 0x244   :  { %v1594_v32 = vpop.eup %1593  ;;  %v1137_v37 = vmul.f32 %v1129_v54, %v1114_v55  ;;  %v1127_v9 = vrot.slane %v1592_v63, 1 }
 0x245   :  { %v1138_v31 = vmul.f32 %v1130_v30, %v1116_v8  ;;  %v1128_v12 = vrot.slane %v1594_v32, 1 }
 0x246   :  { %v1142_v5 = vadd.f32 %v1139_v14, %v1137_v37  ;;  %v1135_v47 = vmul.f32 %v1127_v9, %v1043_v24 }
 0x247   :  { %v1143_v49 = vadd.f32 %v1139_v14, %v1138_v31  ;;  %v1136_v18 = vmul.f32 %v1128_v12, %v1045_v17 }
 0x248   :  { %v1140_v61 = vadd.f32 %v1139_v14, %v1135_v47 }
 0x249   :  { %v1156_v51 = vcombine.low %v1142_v5, %v1143_v49  ;;  %v1141_v7 = vadd.f32 %v1139_v14, %v1136_v18 }
 0x24b   :  { %v1163_v33 = vrot.slane %v1156_v51, %v2589_v28  ;;  %v1148_v34 = vcombine.low %v1140_v61, %v1141_v7 }
 0x24d   :  { %v1168_v52 = vrot.slane %v1163_v33, 7  ;;  %v1155_v45 = vrot.slane %v1148_v34, %v2589_v28 }
 0x24f   :  { %v1170_v62 = vsel %vm1169_vm2, %v1168_v52, %v1155_v45 }
 0x250   :  { %v1172_v41 = vsel %vm1171_vm3, %v1168_v52, %v1170_v62 }
 0x251   :  { %v1174_v42 = vsel %vm1173_vm4, %v1168_v52, %v1172_v41 }
 0x252   :  { %v1176_v1 = vsel %vm1175_vm5, %v1168_v52, %v1174_v42 }
 0x253   :  { %1178 = vst [vmem:[#allocation7] sm:$0xf] %v1176_v1 }
 0x254   :  { %1639 = shalt.err (!%p1636_p1)
}
 0x255   :  { %s1640_s14 = scalar_lea.hbm %s2573_s3, 64 }
 0x256   :  { %p1641_p2 = scmp.ne.s32.totalorder %s2573_s3, %s1640_s14  ;;  %p1644_p3 = scmp.lt.u32.totalorder %s1640_s14, %s2573_s3 }
 0x258   :  { %p1646_p4 = pnand %p1644_p3, %p1641_p2 }
 0x25a   :  { %1649 = shalt.err (!%p1646_p4)
}
 0x25b   :  { %1188 = dma.vmem_to_hbm [thread:$0]  %s1186_s10, 64, %s2573_s3, [#allocation4]  }
 0x25c   :  { %1654 = dma.done.wait [#allocation4], 64  }
 0x25d   :  { %1655 = vsyncadd [#allocation4], 4294967232 }
 0x25e   :  { %1192 = vsyncpa [#allocation3], 1 }
 0x25f   :  { %1193 = vsyncpa [#allocation4], 1 }
 0x260   :  { %1194 = vsyncpa [#allocation5], 1 }

</bundles_post_ra>
